<compile_context>
chip_gen: v5e
topology: v5e:2x2
jax: 0.10.0
libtpu: 0.0.40
codegen_flags: <defaults>
</compile_context>

<pallas_src>
import functools

import numpy as np
import jax
import jax.numpy as jnp
from jax.experimental import pallas as pl
from jax.experimental.pallas import tpu as pltpu

THRESHOLD = 0.01
INV_2THRESH = 1.0 / (2.0 * THRESHOLD)   # 50.0
HALF_THRESH = THRESHOLD / 2.0           # 0.005


# ----------------------------------------------------------------------------
# Deterministic buffer from Loss7.__init__ (unused in forward; kept for parity)
# ----------------------------------------------------------------------------
def make_mask_buffer():
    mask = np.ones(3660, dtype=np.float32)
    idx = [600, 601, 602, 591, 592, 593, 981, 982, 983, 987, 988, 989, 1044, 1045,
           1046, 2343, 2344, 2345, 2289, 2290, 2291, 2286, 2287, 2288, 1938, 1939,
           1940, 1947, 1948, 1949, 45, 46, 47, 39, 40, 41, 30, 31, 32, 24, 25, 26,
           924, 925, 926, 228, 229, 230, 12, 13, 14, 1575, 1576, 1577, 2229, 2230,
           2231, 3303, 3304, 3305, 3288, 3289, 3290, 3276, 3277, 3278, 3579, 3580,
           3581, 3588, 3589, 3590, 3318, 3319, 3320, 3504, 3505, 3506, 3234, 3235,
           3236, 3222, 3223, 3224, 3207, 3208, 3209, 3483, 3484, 3485, 3495, 3496,
           3497, 570, 571, 572, 324, 325, 326, 282, 283, 284, 63, 64, 65, 1629,
           1630, 1631, 1671, 1672, 1673, 1917, 1918, 1919, 2139, 2140, 2141, 2118,
           2119, 2120, 84, 85, 86, 813, 814, 815, 834, 835, 836, 1218, 1219, 1220,
           285, 286, 287, 69, 70, 71, 1632, 1633, 1634, 2508, 2509, 2510, 2124,
           2125, 2126, 78, 79, 80, 819, 820, 821]
    mask[idx] = 10.0
    return jnp.asarray(mask)  # registered buffer; not used in forward()


# ----------------------------------------------------------------------------
# Pallas kernel: per-(batch, outer-chunk, point-tile) partial reductions,
# accumulated over the inner point-tile axis into a per-(batch, outer-chunk)
# lane-dense output block.
# ----------------------------------------------------------------------------
def _loss7_kernel(assign_ref, ver3d_ref, nocs_ref, model_ref, mat_gt_ref,
                  uvp_ref, uvg_ref, seg_ref, lab_ref, out_ref,
                  *, tp, p_inner, n_valid, needs_mask):
    po = pl.program_id(1)
    pi = pl.program_id(2)

    assign = assign_ref[...].astype(jnp.float32)     # (tp, nv)
    mat_gt = mat_gt_ref[...].astype(jnp.float32)     # (tp, nv)
    nocs = nocs_ref[...].astype(jnp.float32)         # (tp, 3)
    ver3d = ver3d_ref[...].astype(jnp.float32)       # (nv, 3)  == ver3d_pred
    uvp = uvp_ref[...].astype(jnp.float32)           # (2, tp)  channels-first
    uvg = uvg_ref[...].astype(jnp.float32)           # (2, tp)
    seg = seg_ref[...].astype(jnp.float32)           # (n_cls, tp)
    labels = lab_ref[...]                            # (1, tp) int32

    # Row validity masks for padded points (emitted only when padding exists).
    if needs_mask:
        gstart = (po * p_inner + pi) * tp
        rrow = jax.lax.broadcasted_iota(jnp.int32, (tp, 1), 0)
        validr = ((rrow + gstart) < n_valid).astype(jnp.float32)   # (tp, 1)
        ccol = jax.lax.broadcasted_iota(jnp.int32, (1, tp), 1)
        validc = ((ccol + gstart) < n_valid).astype(jnp.float32)   # (1, tp)

    # --- stable softmax / log_softmax over the nv (lane) axis -----------------
    m = jnp.max(assign, axis=-1, keepdims=True)
    z = assign - m
    e = jnp.exp(z)
    s = jnp.sum(e, axis=-1, keepdims=True)
    soft_assign = e * (1.0 / s)          # exact reciprocal: s is only (tp, 1)
    log_assign = z - jnp.log(s)

    # --- KL divergence pieces (reduced immediately; no safe_t select) ----------
    # Padded rows have mat_gt == 0 -> contribute exactly 0 to both pieces.
    t_logt = jnp.sum(mat_gt * jnp.log(jnp.maximum(mat_gt, 1e-30)))
    t_logq = jnp.sum(mat_gt * log_assign)
    kl_sum = t_logt - t_logq

    # --- entropy of the soft assignment ---------------------------------------
    neg_ent_rows = jnp.sum(soft_assign * log_assign, axis=-1, keepdims=True)  # (tp,1)
    if needs_mask:
        neg_ent_rows = neg_ent_rows * validr
    ent_sum = -jnp.sum(neg_ent_rows)

    # --- coords = soft_assign @ (ver3d_pred / 9 * 4.5) (MXU matmul) -----------
    coords = jnp.dot(soft_assign, ver3d * 0.5,
                     preferred_element_type=jnp.float32)          # (tp, 3)

    # --- smooth-L1 style correspondence loss (sum) -----------------------------
    diff = jnp.abs(coords - nocs)
    corr = jnp.where(diff > THRESHOLD, diff - HALF_THRESH, diff * diff * INV_2THRESH)
    if needs_mask:
        corr = corr * validr
    corr_sum = jnp.sum(corr)

    # --- uv L1 (padding is zero on both pred & gt -> no mask needed) -----------
    uv_sum = jnp.sum(jnp.abs(uvp - uvg))

    # --- per-point cross entropy; one-hot built from iota (no gather) ----------
    mc = jnp.max(seg, axis=0, keepdims=True)
    lse = mc + jnp.log(jnp.sum(jnp.exp(seg - mc), axis=0, keepdims=True))
    cls_iota = jax.lax.broadcasted_iota(jnp.int32, seg.shape, 0)
    picked = jnp.sum(jnp.where(cls_iota == labels, seg, 0.0),
                     axis=0, keepdims=True)
    ce = lse - picked                                              # (1, tp)
    if needs_mask:
        ce = ce * validc
    ce_sum = jnp.sum(ce)

    # --- pack partial sums into a lane-dense (1, 128) accumulator --------------
    lane = jax.lax.broadcasted_iota(jnp.int32, out_ref.shape, 1)
    vals = (jnp.where(lane == 0, corr_sum, 0.0)
            + jnp.where(lane == 1, kl_sum, 0.0)
            + jnp.where(lane == 2, ent_sum, 0.0)
            + jnp.where(lane == 4, uv_sum, 0.0)
            + jnp.where(lane == 5, ce_sum, 0.0))

    @pl.when(pi == 0)
    def _():
        out_ref[...] = jnp.zeros_like(out_ref)

    # L1 term on the (nv, 3) vertex tensors: computed exactly once per batch
    # element (first inner step of the first outer chunk), not on every tile.
    @pl.when((pi == 0) & (po == 0))
    def _():
        model = model_ref[...].astype(jnp.float32)
        l1 = jnp.sum(jnp.abs(ver3d - model * 9.0))
        out_ref[...] += jnp.where(lane == 3, l1, 0.0)

    out_ref[...] += vals


# ----------------------------------------------------------------------------
# Tiling helpers (generation-aware VMEM budget)
# ----------------------------------------------------------------------------
def _vmem_capacity_bytes():
    try:
        return int(pltpu.get_tpu_info().vmem_capacity_bytes)
    except Exception:
        return 64 << 20   # conservative fallback (v7x per-core VMEM)


def _pick_tile(n_pts, nv, in_itemsize):
    """Pick the point-tile size: largest of (512, 256, 128) whose estimated
    per-step VMEM footprint fits ~5/8 of this generation's VMEM capacity
    (~40 MiB on v7x, ~80 MiB on v5e/v6e).  Prefer exact divisors of n_pts;
    otherwise pick the tile minimizing the padded extent (ties -> bigger)."""
    budget = (_vmem_capacity_bytes() * 5) // 8

    def est(tp):
        big_in = 2 * 2 * tp * nv * in_itemsize   # assign + mat_gt, double-buffered
        temps = 6 * tp * nv * 4                  # live f32 (tp, nv) intermediates
        return big_in + temps + (4 << 20)        # headroom for small operands

    cands = [tp for tp in (512, 256, 128) if est(tp) <= budget]
    if not cands:
        cands = [128]
    divs = [tp for tp in cands if n_pts % tp == 0]
    if divs:
        return max(divs)
    return min(cands, key=lambda tp: (pl.cdiv(n_pts, tp) * tp, -tp))


def _run_partial_sums(assign_mat, ver3d_pred, nocs, model, mat_gt,
                      uv_pred_t, uv_gt_t, seg_pred, seg_labels,
                      tp, p_outer, p_inner, n_valid, needs_mask):
    bs, n_pad, nv = assign_mat.shape
    nv_ver = ver3d_pred.shape[1]
    n_cls = seg_pred.shape[1]
    uv_c = uv_pred_t.shape[1]

    vmem_cap = _vmem_capacity_bytes()
    vmem_limit = int(max(32 << 20, vmem_cap - (16 << 20)))

    kernel = functools.partial(_loss7_kernel, tp=tp, p_inner=p_inner,
                               n_valid=n_valid, needs_mask=needs_mask)

    pt = lambda b, po, pi: (b, po * p_inner + pi, 0)   # point-tiled, (b, pts, *)
    ptl = lambda b, po, pi: (b, 0, po * p_inner + pi)  # point-tiled, lane-dense

    return pl.pallas_call(
        kernel,
        out_shape=jax.ShapeDtypeStruct((bs, p_outer, 1, 128), jnp.float32),
        grid=(bs, p_outer, p_inner),
        in_specs=[
            pl.BlockSpec((None, tp, nv), pt),                         # assign_mat
            pl.BlockSpec((None, nv_ver, 3), lambda b, po, pi: (b, 0, 0)),  # ver3d
            pl.BlockSpec((None, tp, 3), pt),                          # nocs
            pl.BlockSpec((None, nv_ver, 3), lambda b, po, pi: (b, 0, 0)),  # model
            pl.BlockSpec((None, tp, nv), pt),                         # mat_gt
            pl.BlockSpec((None, uv_c, tp), ptl),                      # uv_pred^T
            pl.BlockSpec((None, uv_c, tp), ptl),                      # uv_gt^T
            pl.BlockSpec((None, n_cls, tp), ptl),                     # seg logits
            pl.BlockSpec((None, 1, tp), ptl),                         # seg labels
        ],
        out_specs=pl.BlockSpec((None, None, 1, 128),
                               lambda b, po, pi: (b, po, 0, 0)),
        compiler_params=pltpu.CompilerParams(
            dimension_semantics=("parallel", "parallel", "arbitrary"),
            vmem_limit_bytes=vmem_limit),
    )(assign_mat, ver3d_pred, nocs, model, mat_gt,
      uv_pred_t, uv_gt_t, seg_pred, seg_labels)


# ----------------------------------------------------------------------------
# Forward wrapper mirroring Loss7.forward (fully jit-able: no host readback)
# ----------------------------------------------------------------------------
def loss7_forward(assign_mat, seg_pred, ver3d_pred, uv_pred, nocs, model,
                  seg_gt, mat_gt, uv_gt,
                  corr_wt=1.0, l1_wt=1.0, uv_wt=1.0, mat_wt=0.1, seg_wt=0.1):
    bs, n_pts, nv = assign_mat.shape
    nv_ver = ver3d_pred.shape[1]   # torch code names this "n_pts" (inst_shape)
    uv_c = uv_pred.shape[2]

    tp = _pick_tile(n_pts, nv, assign_mat.dtype.itemsize)
    n_pad = pl.cdiv(n_pts, tp) * tp
    pad = n_pad - n_pts
    needs_mask = pad > 0

    # Glue only (tiny / layout work): channels-first uv so the long point axis
    # is lane-dense, int32 labels so the kernel builds the one-hot via iota.
    # No float32 upcast here -- inputs go to the kernel in their native dtype.
    uv_pred_t = jnp.swapaxes(uv_pred, 1, 2)
    uv_gt_t = jnp.swapaxes(uv_gt, 1, 2)
    seg_labels = seg_gt.astype(jnp.int32).reshape(bs, 1, n_pts)

    if pad:
        assign_p = jnp.pad(assign_mat, ((0, 0), (0, pad), (0, 0)))
        mat_gt_p = jnp.pad(mat_gt, ((0, 0), (0, pad), (0, 0)))
        nocs_p = jnp.pad(nocs, ((0, 0), (0, pad), (0, 0)))
        uv_pred_tp = jnp.pad(uv_pred_t, ((0, 0), (0, 0), (0, pad)))
        uv_gt_tp = jnp.pad(uv_gt_t, ((0, 0), (0, 0), (0, pad)))
        seg_pred_p = jnp.pad(seg_pred, ((0, 0), (0, 0), (0, pad)))
        seg_labels_p = jnp.pad(seg_labels, ((0, 0), (0, 0), (0, pad)))
    else:
        assign_p, mat_gt_p, nocs_p = assign_mat, mat_gt, nocs
        uv_pred_tp, uv_gt_tp = uv_pred_t, uv_gt_t
        seg_pred_p, seg_labels_p = seg_pred, seg_labels

    p_total = n_pad // tp
    p_outer = 2 if (p_total >= 2 and p_total % 2 == 0) else 1   # v7x megacore
    p_inner = p_total // p_outer

    partial = _run_partial_sums(assign_p, ver3d_pred, nocs_p, model, mat_gt_p,
                                uv_pred_tp, uv_gt_tp, seg_pred_p, seg_labels_p,
                                tp, p_outer, p_inner, n_pts, needs_mask)

    sums = jnp.sum(partial, axis=(0, 1, 2))                 # (128,)
    corr_sum, kl_sum, ent_sum, l1_sum, uv_sum, ce_sum = (sums[i] for i in range(6))

    corr_loss = corr_wt * corr_sum / (bs * n_pts)

    # On-device weight selection, same thresholds/assignments as the PyTorch
    # `.item()` branch, so the whole forward stays one jitted graph.
    lt_001 = corr_loss < 0.01
    lt_01 = corr_loss < 0.1
    mat_wt_e = jnp.where(lt_001, 0.001, jnp.where(lt_01, 0.01, mat_wt))
    uv_wt_e = jnp.where(lt_001, 0.5, uv_wt)
    l1_wt_e = jnp.where(lt_001, 0.5, jnp.where(lt_01, 1.0, l1_wt))
    seg_wt_e = jnp.where(lt_001, seg_wt, jnp.where(lt_01, 0.01, seg_wt))

    kl_loss = mat_wt_e * kl_sum / (bs * nv_ver)
    entropy_loss = 0.001 * ent_sum / (bs * n_pts)
    uv_loss = uv_wt_e * uv_sum / (bs * n_pts * uv_c)
    l1_loss = l1_wt_e * l1_sum / (bs * nv_ver * 3)
    seg_loss = seg_wt_e * ce_sum / (bs * n_pts)

    total_loss = corr_loss + uv_loss + l1_loss + kl_loss + seg_loss + entropy_loss
    return total_loss, corr_loss, l1_loss, uv_loss, kl_loss, seg_loss


# ----------------------------------------------------------------------------
# Pure-JAX reference (sanity check of the kernel path)
# ----------------------------------------------------------------------------
def loss7_reference(assign_mat, seg_pred, ver3d_pred, uv_pred, nocs, model,
                    seg_gt, mat_gt, uv_gt,
                    corr_wt=1.0, l1_wt=1.0, uv_wt=1.0, mat_wt=0.1, seg_wt=0.1):
    inst_shape = ver3d_pred / 9.0
    bs, nvr, _ = inst_shape.shape
    soft = jax.nn.softmax(assign_mat, axis=2)
    coords = jnp.einsum('bpn,bnd->bpd', soft, inst_shape * 4.5,
                        precision=jax.lax.Precision.HIGHEST)
    diff = jnp.abs(coords - nocs)
    less = diff ** 2 / (2.0 * THRESHOLD)
    higher = diff - THRESHOLD / 2.0
    corr = jnp.where(diff > THRESHOLD, higher, less)
    corr_loss = corr_wt * jnp.mean(jnp.sum(corr, axis=2))
    log_assign = jax.nn.log_softmax(assign_mat, axis=2)

    lt_001 = corr_loss < 0.01
    lt_01 = corr_loss < 0.1
    mat_wt = jnp.where(lt_001, 0.001, jnp.where(lt_01, 0.01, mat_wt))
    uv_wt = jnp.where(lt_001, 0.5, uv_wt)
    l1_wt = jnp.where(lt_001, 0.5, jnp.where(lt_01, 1.0, l1_wt))
    seg_wt = jnp.where(lt_001, seg_wt, jnp.where(lt_01, 0.01, seg_wt))

    safe = jnp.where(mat_gt > 0, mat_gt, 1.0)
    kl = jnp.sum(jnp.where(mat_gt > 0, mat_gt * (jnp.log(safe) - log_assign), 0.0))
    kl_loss = mat_wt * kl / (assign_mat.shape[0] * nvr)
    entropy_loss = 0.001 * jnp.mean(-jnp.sum(soft * log_assign, axis=2))
    uv_loss = uv_wt * jnp.mean(jnp.abs(uv_pred - uv_gt))
    l1_loss = l1_wt * jnp.mean(jnp.abs(ver3d_pred - model * 9.0))
    logp = jax.nn.log_softmax(seg_pred, axis=1)
    ce = -jnp.take_along_axis(logp, seg_gt[:, None, :], axis=1)
    seg_loss = seg_wt * jnp.mean(ce)
    total = corr_loss + uv_loss + l1_loss + kl_loss + seg_loss + entropy_loss
    return total, corr_loss, l1_loss, uv_loss, kl_loss, seg_loss


if __name__ == "__main__":
    _mask = make_mask_buffer()      # unused in forward(), kept for module parity
    fwd = jax.jit(loss7_forward)    # no host readback anywhere -> jit-able

    def run_case(seed, bs, n_pts, nv, n_cls, uv_c):
        ks = jax.random.split(jax.random.PRNGKey(seed), 9)
        assign_mat = jax.random.normal(ks[0], (bs, n_pts, nv), jnp.float32)
        seg_pred = jax.random.normal(ks[1], (bs, n_cls, n_pts), jnp.float32)
        ver3d_pred = jax.random.normal(ks[2], (bs, nv, 3), jnp.float32)
        uv_pred = jax.random.uniform(ks[3], (bs, n_pts, uv_c), jnp.float32)
        nocs = jax.random.uniform(ks[4], (bs, n_pts, 3), jnp.float32) - 0.5
        model = jax.random.uniform(ks[5], (bs, nv, 3), jnp.float32) - 0.5
        seg_gt = jax.random.randint(ks[6], (bs, n_pts), 0, n_cls, jnp.int32)
        mat_gt = jax.nn.softmax(
            jax.random.normal(ks[7], (bs, n_pts, nv), jnp.float32), axis=2)
        uv_gt = jax.random.uniform(ks[8], (bs, n_pts, uv_c), jnp.float32)

        out = fwd(assign_mat, seg_pred, ver3d_pred, uv_pred, nocs, model,
                  seg_gt, mat_gt, uv_gt)
        out = jax.block_until_ready(jnp.stack(out))
        ref = jnp.stack(loss7_reference(assign_mat, seg_pred, ver3d_pred, uv_pred,
                                        nocs, model, seg_gt, mat_gt, uv_gt))
        assert np.allclose(np.asarray(out), np.asarray(ref),
                           rtol=5e-3, atol=1e-5), (bs, n_pts, nv, out, ref)

    # 1) baseline: bs=2, n_pts=384 -> tp=128, 3 inner accumulation steps.
    run_case(0, bs=2, n_pts=384, nv=128, n_cls=4, uv_c=2)
    # 2) bs=1 megacore case: n_pts=1024 -> tp=512, outer split of 2.
    run_case(0, bs=1, n_pts=1024, nv=128, n_cls=6, uv_c=2)
    # 3) odd n_pts: 300 -> padded to 384, in-kernel row masking path.
    run_case(0, bs=2, n_pts=300, nv=128, n_cls=4, uv_c=2)

    print("KERNEL_OK")
</pallas_src>

<mosaic_0001>
module attributes {stable_mosaic.version = 11 : i64} {
  func.func @_loss7_kernel(%arg0: i32, %arg1: i32, %arg2: i32, %arg3: memref<1x128x128xf32, #tpu.memory_space<vmem>>, %arg4: memref<1x128x3xf32, #tpu.memory_space<vmem>>, %arg5: memref<1x128x3xf32, #tpu.memory_space<vmem>>, %arg6: memref<1x128x3xf32, #tpu.memory_space<vmem>>, %arg7: memref<1x128x128xf32, #tpu.memory_space<vmem>>, %arg8: memref<1x2x128xf32, #tpu.memory_space<vmem>>, %arg9: memref<1x2x128xf32, #tpu.memory_space<vmem>>, %arg10: memref<1x4x128xf32, #tpu.memory_space<vmem>>, %arg11: memref<1x1x128xi32, #tpu.memory_space<vmem>>, %arg12: memref<1x1x1x128xf32, #tpu.memory_space<vmem>>) attributes {dimension_semantics = [#tpu.dimension_semantics<parallel>, #tpu.dimension_semantics<parallel>, #tpu.dimension_semantics<arbitrary>], iteration_bounds = array<i64: 2, 1, 3>, scalar_prefetch = 0 : i64, scratch_operands = 0 : i64, tpu.core_type = #tpu.core_type<tc>, window_params = [{transform_indices = @transform_0, window_bounds = array<i64: 1, 128, 128>}, {transform_indices = @transform_1, window_bounds = array<i64: 1, 128, 3>}, {transform_indices = @transform_2, window_bounds = array<i64: 1, 128, 3>}, {transform_indices = @transform_3, window_bounds = array<i64: 1, 128, 3>}, {transform_indices = @transform_4, window_bounds = array<i64: 1, 128, 128>}, {transform_indices = @transform_5, window_bounds = array<i64: 1, 2, 128>}, {transform_indices = @transform_6, window_bounds = array<i64: 1, 2, 128>}, {transform_indices = @transform_7, window_bounds = array<i64: 1, 4, 128>}, {transform_indices = @transform_8, window_bounds = array<i64: 1, 1, 128>}, {transform_indices = @transform_9, window_bounds = array<i64: 1, 1, 1, 128>}]} {
    %c0 = arith.constant 0 : index
    %c0_0 = arith.constant 0 : index
    %c0_1 = arith.constant 0 : index
    %0 = vector.load %arg3[%c0, %c0_0, %c0_1] : memref<1x128x128xf32, #tpu.memory_space<vmem>>, vector<1x128x128xf32>
    %1 = vector.shape_cast %0 : vector<1x128x128xf32> to vector<128x128xf32>
    %c0_2 = arith.constant 0 : index
    %c0_3 = arith.constant 0 : index
    %c0_4 = arith.constant 0 : index
    %2 = vector.load %arg7[%c0_2, %c0_3, %c0_4] : memref<1x128x128xf32, #tpu.memory_space<vmem>>, vector<1x128x128xf32>
    %3 = vector.shape_cast %2 : vector<1x128x128xf32> to vector<128x128xf32>
    %c0_5 = arith.constant 0 : index
    %c0_6 = arith.constant 0 : index
    %c0_7 = arith.constant 0 : index
    %4 = vector.load %arg5[%c0_5, %c0_6, %c0_7] : memref<1x128x3xf32, #tpu.memory_space<vmem>>, vector<1x128x3xf32>
    %5 = vector.shape_cast %4 : vector<1x128x3xf32> to vector<128x3xf32>
    %c0_8 = arith.constant 0 : index
    %c0_9 = arith.constant 0 : index
    %c0_10 = arith.constant 0 : index
    %6 = vector.load %arg4[%c0_8, %c0_9, %c0_10] : memref<1x128x3xf32, #tpu.memory_space<vmem>>, vector<1x128x3xf32>
    %7 = vector.shape_cast %6 : vector<1x128x3xf32> to vector<128x3xf32>
    %c0_11 = arith.constant 0 : index
    %c0_12 = arith.constant 0 : index
    %c0_13 = arith.constant 0 : index
    %8 = vector.load %arg8[%c0_11, %c0_12, %c0_13] : memref<1x2x128xf32, #tpu.memory_space<vmem>>, vector<1x2x128xf32>
    %9 = vector.shape_cast %8 : vector<1x2x128xf32> to vector<2x128xf32>
    %c0_14 = arith.constant 0 : index
    %c0_15 = arith.constant 0 : index
    %c0_16 = arith.constant 0 : index
    %10 = vector.load %arg9[%c0_14, %c0_15, %c0_16] : memref<1x2x128xf32, #tpu.memory_space<vmem>>, vector<1x2x128xf32>
    %11 = vector.shape_cast %10 : vector<1x2x128xf32> to vector<2x128xf32>
    %c0_17 = arith.constant 0 : index
    %c0_18 = arith.constant 0 : index
    %c0_19 = arith.constant 0 : index
    %12 = vector.load %arg10[%c0_17, %c0_18, %c0_19] : memref<1x4x128xf32, #tpu.memory_space<vmem>>, vector<1x4x128xf32>
    %13 = vector.shape_cast %12 : vector<1x4x128xf32> to vector<4x128xf32>
    %c0_20 = arith.constant 0 : index
    %c0_21 = arith.constant 0 : index
    %c0_22 = arith.constant 0 : index
    %14 = vector.load %arg11[%c0_20, %c0_21, %c0_22] : memref<1x1x128xi32, #tpu.memory_space<vmem>>, vector<1x1x128xi32>
    %15 = vector.shape_cast %14 : vector<1x1x128xi32> to vector<1x128xi32>
    %cst = arith.constant dense<0xFF800000> : vector<128xf32>
    %16 = vector.multi_reduction <maximumf>, %1, %cst [1] : vector<128x128xf32> to vector<128xf32>
    %17 = vector.shape_cast %16 : vector<128xf32> to vector<128x1xf32>
    %18 = vector.broadcast %17 : vector<128x1xf32> to vector<128x128xf32>
    %19 = arith.subf %1, %18 : vector<128x128xf32>
    %20 = math.exp %19 : vector<128x128xf32>
    %cst_23 = arith.constant dense<0.000000e+00> : vector<128xf32>
    %21 = vector.multi_reduction <add>, %20, %cst_23 [1] : vector<128x128xf32> to vector<128xf32>
    %22 = vector.shape_cast %21 : vector<128xf32> to vector<128x1xf32>
    %cst_24 = arith.constant 1.000000e+00 : f32
    %23 = vector.broadcast %cst_24 : f32 to vector<128x1xf32>
    %24 = arith.divf %23, %22 : vector<128x1xf32>
    %25 = vector.broadcast %24 : vector<128x1xf32> to vector<128x128xf32>
    %26 = arith.mulf %20, %25 : vector<128x128xf32>
    %27 = math.log %22 : vector<128x1xf32>
    %28 = vector.broadcast %27 : vector<128x1xf32> to vector<128x128xf32>
    %29 = arith.subf %19, %28 : vector<128x128xf32>
    %cst_25 = arith.constant 1.000000e-30 : f32
    %30 = vector.broadcast %cst_25 : f32 to vector<128x128xf32>
    %31 = arith.maximumf %3, %30 : vector<128x128xf32>
    %32 = math.log %31 : vector<128x128xf32>
    %33 = arith.mulf %3, %32 : vector<128x128xf32>
    %34 = vector.shape_cast %33 : vector<128x128xf32> to vector<1x128x128xf32>
    %cst_26 = arith.constant dense<0.000000e+00> : vector<1xf32>
    %35 = vector.multi_reduction <add>, %34, %cst_26 [1, 2] : vector<1x128x128xf32> to vector<1xf32>
    %36 = vector.shape_cast %35 : vector<1xf32> to vector<1x1x1xf32>
    %37 = vector.extract %36[0, 0, 0] : f32 from vector<1x1x1xf32>
    %38 = arith.mulf %3, %29 : vector<128x128xf32>
    %39 = vector.shape_cast %38 : vector<128x128xf32> to vector<1x128x128xf32>
    %cst_27 = arith.constant dense<0.000000e+00> : vector<1xf32>
    %40 = vector.multi_reduction <add>, %39, %cst_27 [1, 2] : vector<1x128x128xf32> to vector<1xf32>
    %41 = vector.shape_cast %40 : vector<1xf32> to vector<1x1x1xf32>
    %42 = vector.extract %41[0, 0, 0] : f32 from vector<1x1x1xf32>
    %43 = arith.subf %37, %42 : f32
    %44 = arith.mulf %26, %29 : vector<128x128xf32>
    %cst_28 = arith.constant dense<0.000000e+00> : vector<128xf32>
    %45 = vector.multi_reduction <add>, %44, %cst_28 [1] : vector<128x128xf32> to vector<128xf32>
    %46 = vector.shape_cast %45 : vector<128xf32> to vector<128x1xf32>
    %47 = vector.shape_cast %46 : vector<128x1xf32> to vector<1x128x1xf32>
    %cst_29 = arith.constant dense<0.000000e+00> : vector<1xf32>
    %48 = vector.multi_reduction <add>, %47, %cst_29 [1, 2] : vector<1x128x1xf32> to vector<1xf32>
    %49 = vector.shape_cast %48 : vector<1xf32> to vector<1x1x1xf32>
    %50 = vector.extract %49[0, 0, 0] : f32 from vector<1x1x1xf32>
    %cst_30 = arith.constant 0.000000e+00 : f32
    %51 = arith.subf %cst_30, %50 : f32
    %cst_31 = arith.constant 5.000000e-01 : f32
    %52 = vector.broadcast %cst_31 : f32 to vector<128x3xf32>
    %53 = arith.mulf %7, %52 : vector<128x3xf32>
    %cst_32 = arith.constant dense<0.000000e+00> : vector<128x3xf32>
    %54 = tpu.matmul %26, %53, %cst_32 {dimension_numbers = #tpu.dot_dimension_numbers<[1], [0], [0], [1], [0, 0, 1, 1], [], []>} : vector<128x128xf32>, vector<128x3xf32>, vector<128x3xf32> -> vector<128x3xf32>
    %55 = arith.subf %54, %5 : vector<128x3xf32>
    %56 = math.absf %55 : vector<128x3xf32>
    %cst_33 = arith.constant 0.00999999977 : f32
    %57 = vector.broadcast %cst_33 : f32 to vector<128x3xf32>
    %58 = arith.cmpf ogt, %56, %57 : vector<128x3xf32>
    %cst_34 = arith.constant 5.000000e-03 : f32
    %59 = vector.broadcast %cst_34 : f32 to vector<128x3xf32>
    %60 = arith.subf %56, %59 : vector<128x3xf32>
    %61 = arith.mulf %56, %56 : vector<128x3xf32>
    %cst_35 = arith.constant 5.000000e+01 : f32
    %62 = vector.broadcast %cst_35 : f32 to vector<128x3xf32>
    %63 = arith.mulf %61, %62 : vector<128x3xf32>
    %64 = arith.select %58, %60, %63 : vector<128x3xi1>, vector<128x3xf32>
    %65 = vector.shape_cast %64 : vector<128x3xf32> to vector<1x128x3xf32>
    %cst_36 = arith.constant dense<0.000000e+00> : vector<1xf32>
    %66 = vector.multi_reduction <add>, %65, %cst_36 [1, 2] : vector<1x128x3xf32> to vector<1xf32>
    %67 = vector.shape_cast %66 : vector<1xf32> to vector<1x1x1xf32>
    %68 = vector.extract %67[0, 0, 0] : f32 from vector<1x1x1xf32>
    %69 = arith.subf %9, %11 : vector<2x128xf32>
    %70 = math.absf %69 : vector<2x128xf32>
    %71 = vector.shape_cast %70 : vector<2x128xf32> to vector<1x2x128xf32>
    %cst_37 = arith.constant dense<0.000000e+00> : vector<1xf32>
    %72 = vector.multi_reduction <add>, %71, %cst_37 [1, 2] : vector<1x2x128xf32> to vector<1xf32>
    %73 = vector.shape_cast %72 : vector<1xf32> to vector<1x1x1xf32>
    %74 = vector.extract %73[0, 0, 0] : f32 from vector<1x1x1xf32>
    %cst_38 = arith.constant dense<0xFF800000> : vector<128xf32>
    %75 = vector.multi_reduction <maximumf>, %13, %cst_38 [0] : vector<4x128xf32> to vector<128xf32>
    %76 = vector.shape_cast %75 : vector<128xf32> to vector<1x128xf32>
    %77 = vector.broadcast %76 : vector<1x128xf32> to vector<4x128xf32>
    %78 = arith.subf %13, %77 : vector<4x128xf32>
    %79 = math.exp %78 : vector<4x128xf32>
    %cst_39 = arith.constant dense<0.000000e+00> : vector<128xf32>
    %80 = vector.multi_reduction <add>, %79, %cst_39 [0] : vector<4x128xf32> to vector<128xf32>
    %81 = vector.shape_cast %80 : vector<128xf32> to vector<1x128xf32>
    %82 = math.log %81 : vector<1x128xf32>
    %83 = arith.addf %76, %82 : vector<1x128xf32>
    %84 = tpu.iota {dimensions = array<i32: 0>} : vector<4x128xi32>
    %85 = vector.broadcast %15 : vector<1x128xi32> to vector<4x128xi32>
    %86 = arith.cmpi eq, %84, %85 : vector<4x128xi32>
    %cst_40 = arith.constant 0.000000e+00 : f32
    %87 = vector.broadcast %cst_40 : f32 to vector<4x128xf32>
    %88 = arith.select %86, %13, %87 : vector<4x128xi1>, vector<4x128xf32>
    %cst_41 = arith.constant dense<0.000000e+00> : vector<128xf32>
    %89 = vector.multi_reduction <add>, %88, %cst_41 [0] : vector<4x128xf32> to vector<128xf32>
    %90 = vector.shape_cast %89 : vector<128xf32> to vector<1x128xf32>
    %91 = arith.subf %83, %90 : vector<1x128xf32>
    %92 = vector.shape_cast %91 : vector<1x128xf32> to vector<1x1x128xf32>
    %cst_42 = arith.constant dense<0.000000e+00> : vector<1xf32>
    %93 = vector.multi_reduction <add>, %92, %cst_42 [1, 2] : vector<1x1x128xf32> to vector<1xf32>
    %94 = vector.shape_cast %93 : vector<1xf32> to vector<1x1x1xf32>
    %95 = vector.extract %94[0, 0, 0] : f32 from vector<1x1x1xf32>
    %96 = tpu.iota {dimensions = array<i32: 1>} : vector<1x128xi32>
    %c0_i32 = arith.constant 0 : i32
    %97 = vector.broadcast %c0_i32 : i32 to vector<1x128xi32>
    %98 = arith.cmpi eq, %96, %97 : vector<1x128xi32>
    %cst_43 = arith.constant 0.000000e+00 : f32
    %99 = vector.broadcast %68 : f32 to vector<1x128xf32>
    %100 = vector.broadcast %cst_43 : f32 to vector<1x128xf32>
    %101 = arith.select %98, %99, %100 : vector<1x128xi1>, vector<1x128xf32>
    %c1_i32 = arith.constant 1 : i32
    %102 = vector.broadcast %c1_i32 : i32 to vector<1x128xi32>
    %103 = arith.cmpi eq, %96, %102 : vector<1x128xi32>
    %cst_44 = arith.constant 0.000000e+00 : f32
    %104 = vector.broadcast %43 : f32 to vector<1x128xf32>
    %105 = vector.broadcast %cst_44 : f32 to vector<1x128xf32>
    %106 = arith.select %103, %104, %105 : vector<1x128xi1>, vector<1x128xf32>
    %107 = arith.addf %101, %106 : vector<1x128xf32>
    %c2_i32 = arith.constant 2 : i32
    %108 = vector.broadcast %c2_i32 : i32 to vector<1x128xi32>
    %109 = arith.cmpi eq, %96, %108 : vector<1x128xi32>
    %cst_45 = arith.constant 0.000000e+00 : f32
    %110 = vector.broadcast %51 : f32 to vector<1x128xf32>
    %111 = vector.broadcast %cst_45 : f32 to vector<1x128xf32>
    %112 = arith.select %109, %110, %111 : vector<1x128xi1>, vector<1x128xf32>
    %113 = arith.addf %107, %112 : vector<1x128xf32>
    %c4_i32 = arith.constant 4 : i32
    %114 = vector.broadcast %c4_i32 : i32 to vector<1x128xi32>
    %115 = arith.cmpi eq, %96, %114 : vector<1x128xi32>
    %cst_46 = arith.constant 0.000000e+00 : f32
    %116 = vector.broadcast %74 : f32 to vector<1x128xf32>
    %117 = vector.broadcast %cst_46 : f32 to vector<1x128xf32>
    %118 = arith.select %115, %116, %117 : vector<1x128xi1>, vector<1x128xf32>
    %119 = arith.addf %113, %118 : vector<1x128xf32>
    %c5_i32 = arith.constant 5 : i32
    %120 = vector.broadcast %c5_i32 : i32 to vector<1x128xi32>
    %121 = arith.cmpi eq, %96, %120 : vector<1x128xi32>
    %cst_47 = arith.constant 0.000000e+00 : f32
    %122 = vector.broadcast %95 : f32 to vector<1x128xf32>
    %123 = vector.broadcast %cst_47 : f32 to vector<1x128xf32>
    %124 = arith.select %121, %122, %123 : vector<1x128xi1>, vector<1x128xf32>
    %125 = arith.addf %119, %124 : vector<1x128xf32>
    %c0_i32_48 = arith.constant 0 : i32
    %126 = arith.cmpi eq, %arg2, %c0_i32_48 : i32
    %127 = arith.extui %126 : i1 to i32
    %c0_i32_49 = arith.constant 0 : i32
    %128 = arith.cmpi ne, %127, %c0_i32_49 : i32
    scf.if %128 {
      %cst_61 = arith.constant 0.000000e+00 : f32
      %140 = vector.broadcast %cst_61 : f32 to vector<1x128xf32>
      %c0_62 = arith.constant 0 : index
      %c0_63 = arith.constant 0 : index
      %c0_64 = arith.constant 0 : index
      %c0_65 = arith.constant 0 : index
      %141 = vector.load %arg12[%c0_62, %c0_63, %c0_64, %c0_65] : memref<1x1x1x128xf32, #tpu.memory_space<vmem>>, vector<1x1x1x128xf32>
      %142 = vector.shape_cast %141 : vector<1x1x1x128xf32> to vector<1x128xf32>
      %143 = vector.shape_cast %140 : vector<1x128xf32> to vector<1x1x1x128xf32>
      tpu.vector_store %arg12[%c0_62, %c0_63, %c0_64, %c0_65], %143 {strides = array<i32>} : memref<1x1x1x128xf32, #tpu.memory_space<vmem>>, vector<1x1x1x128xf32>,
    } else {
    }
    %c0_i32_50 = arith.constant 0 : i32
    %129 = arith.cmpi eq, %arg2, %c0_i32_50 : i32
    %c0_i32_51 = arith.constant 0 : i32
    %130 = arith.cmpi eq, %arg1, %c0_i32_51 : i32
    %131 = arith.andi %129, %130 : i1
    %132 = arith.extui %131 : i1 to i32
    %c0_i32_52 = arith.constant 0 : i32
    %133 = arith.cmpi ne, %132, %c0_i32_52 : i32
    scf.if %133 {
      %c0_61 = arith.constant 0 : index
      %c0_62 = arith.constant 0 : index
      %c0_63 = arith.constant 0 : index
      %140 = vector.load %arg6[%c0_61, %c0_62, %c0_63] : memref<1x128x3xf32, #tpu.memory_space<vmem>>, vector<1x128x3xf32>
      %141 = vector.shape_cast %140 : vector<1x128x3xf32> to vector<128x3xf32>
      %cst_64 = arith.constant 9.000000e+00 : f32
      %142 = vector.broadcast %cst_64 : f32 to vector<128x3xf32>
      %143 = arith.mulf %141, %142 : vector<128x3xf32>
      %144 = arith.subf %7, %143 : vector<128x3xf32>
      %145 = math.absf %144 : vector<128x3xf32>
      %146 = vector.shape_cast %145 : vector<128x3xf32> to vector<1x128x3xf32>
      %cst_65 = arith.constant dense<0.000000e+00> : vector<1xf32>
      %147 = vector.multi_reduction <add>, %146, %cst_65 [1, 2] : vector<1x128x3xf32> to vector<1xf32>
      %148 = vector.shape_cast %147 : vector<1xf32> to vector<1x1x1xf32>
      %149 = vector.extract %148[0, 0, 0] : f32 from vector<1x1x1xf32>
      %c0_66 = arith.constant 0 : index
      %c0_67 = arith.constant 0 : index
      %c0_68 = arith.constant 0 : index
      %c0_69 = arith.constant 0 : index
      %150 = vector.load %arg12[%c0_66, %c0_67, %c0_68, %c0_69] : memref<1x1x1x128xf32, #tpu.memory_space<vmem>>, vector<1x1x1x128xf32>
      %151 = vector.shape_cast %150 : vector<1x1x1x128xf32> to vector<1x128xf32>
      %c3_i32 = arith.constant 3 : i32
      %152 = vector.broadcast %c3_i32 : i32 to vector<1x128xi32>
      %153 = arith.cmpi eq, %96, %152 : vector<1x128xi32>
      %cst_70 = arith.constant 0.000000e+00 : f32
      %154 = vector.broadcast %149 : f32 to vector<1x128xf32>
      %155 = vector.broadcast %cst_70 : f32 to vector<1x128xf32>
      %156 = arith.select %153, %154, %155 : vector<1x128xi1>, vector<1x128xf32>
      %157 = arith.addf %151, %156 : vector<1x128xf32>
      %c0_71 = arith.constant 0 : index
      %c0_72 = arith.constant 0 : index
      %c0_73 = arith.constant 0 : index
      %c0_74 = arith.constant 0 : index
      %158 = vector.load %arg12[%c0_71, %c0_72, %c0_73, %c0_74] : memref<1x1x1x128xf32, #tpu.memory_space<vmem>>, vector<1x1x1x128xf32>
      %159 = vector.shape_cast %158 : vector<1x1x1x128xf32> to vector<1x128xf32>
      %160 = vector.shape_cast %157 : vector<1x128xf32> to vector<1x1x1x128xf32>
      tpu.vector_store %arg12[%c0_71, %c0_72, %c0_73, %c0_74], %160 {strides = array<i32>} : memref<1x1x1x128xf32, #tpu.memory_space<vmem>>, vector<1x1x1x128xf32>,
    } else {
    }
    %c0_53 = arith.constant 0 : index
    %c0_54 = arith.constant 0 : index
    %c0_55 = arith.constant 0 : index
    %c0_56 = arith.constant 0 : index
    %134 = vector.load %arg12[%c0_53, %c0_54, %c0_55, %c0_56] : memref<1x1x1x128xf32, #tpu.memory_space<vmem>>, vector<1x1x1x128xf32>
    %135 = vector.shape_cast %134 : vector<1x1x1x128xf32> to vector<1x128xf32>
    %136 = arith.addf %135, %125 : vector<1x128xf32>
    %c0_57 = arith.constant 0 : index
    %c0_58 = arith.constant 0 : index
    %c0_59 = arith.constant 0 : index
    %c0_60 = arith.constant 0 : index
    %137 = vector.load %arg12[%c0_57, %c0_58, %c0_59, %c0_60] : memref<1x1x1x128xf32, #tpu.memory_space<vmem>>, vector<1x1x1x128xf32>
    %138 = vector.shape_cast %137 : vector<1x1x1x128xf32> to vector<1x128xf32>
    %139 = vector.shape_cast %136 : vector<1x128xf32> to vector<1x1x1x128xf32>
    tpu.vector_store %arg12[%c0_57, %c0_58, %c0_59, %c0_60], %139 {strides = array<i32>} : memref<1x1x1x128xf32, #tpu.memory_space<vmem>>, vector<1x1x1x128xf32>,
    return
  }
  func.func @transform_0(%arg0: i32, %arg1: i32, %arg2: i32) -> (i32, i32, i32) {
    %c3_i32 = arith.constant 3 : i32
    %0 = arith.muli %arg1, %c3_i32 : i32
    %1 = arith.addi %0, %arg2 : i32
    %c0_i32 = arith.constant 0 : i32
    %c0_i32_0 = arith.constant 0 : i32
    return %arg0, %1, %c0_i32 : i32, i32, i32
  }
  func.func @transform_1(%arg0: i32, %arg1: i32, %arg2: i32) -> (i32, i32, i32) {
    %c0_i32 = arith.constant 0 : i32
    %c0_i32_0 = arith.constant 0 : i32
    %c0_i32_1 = arith.constant 0 : i32
    return %arg0, %c0_i32, %c0_i32_0 : i32, i32, i32
  }
  func.func @transform_2(%arg0: i32, %arg1: i32, %arg2: i32) -> (i32, i32, i32) {
    %c3_i32 = arith.constant 3 : i32
    %0 = arith.muli %arg1, %c3_i32 : i32
    %1 = arith.addi %0, %arg2 : i32
    %c0_i32 = arith.constant 0 : i32
    %c0_i32_0 = arith.constant 0 : i32
    return %arg0, %1, %c0_i32 : i32, i32, i32
  }
  func.func @transform_3(%arg0: i32, %arg1: i32, %arg2: i32) -> (i32, i32, i32) {
    %c0_i32 = arith.constant 0 : i32
    %c0_i32_0 = arith.constant 0 : i32
    %c0_i32_1 = arith.constant 0 : i32
    return %arg0, %c0_i32, %c0_i32_0 : i32, i32, i32
  }
  func.func @transform_4(%arg0: i32, %arg1: i32, %arg2: i32) -> (i32, i32, i32) {
    %c3_i32 = arith.constant 3 : i32
    %0 = arith.muli %arg1, %c3_i32 : i32
    %1 = arith.addi %0, %arg2 : i32
    %c0_i32 = arith.constant 0 : i32
    %c0_i32_0 = arith.constant 0 : i32
    return %arg0, %1, %c0_i32 : i32, i32, i32
  }
  func.func @transform_5(%arg0: i32, %arg1: i32, %arg2: i32) -> (i32, i32, i32) {
    %c3_i32 = arith.constant 3 : i32
    %0 = arith.muli %arg1, %c3_i32 : i32
    %1 = arith.addi %0, %arg2 : i32
    %c0_i32 = arith.constant 0 : i32
    %c0_i32_0 = arith.constant 0 : i32
    return %arg0, %c0_i32, %1 : i32, i32, i32
  }
  func.func @transform_6(%arg0: i32, %arg1: i32, %arg2: i32) -> (i32, i32, i32) {
    %c3_i32 = arith.constant 3 : i32
    %0 = arith.muli %arg1, %c3_i32 : i32
    %1 = arith.addi %0, %arg2 : i32
    %c0_i32 = arith.constant 0 : i32
    %c0_i32_0 = arith.constant 0 : i32
    return %arg0, %c0_i32, %1 : i32, i32, i32
  }
  func.func @transform_7(%arg0: i32, %arg1: i32, %arg2: i32) -> (i32, i32, i32) {
    %c3_i32 = arith.constant 3 : i32
    %0 = arith.muli %arg1, %c3_i32 : i32
    %1 = arith.addi %0, %arg2 : i32
    %c0_i32 = arith.constant 0 : i32
    %c0_i32_0 = arith.constant 0 : i32
    return %arg0, %c0_i32, %1 : i32, i32, i32
  }
  func.func @transform_8(%arg0: i32, %arg1: i32, %arg2: i32) -> (i32, i32, i32) {
    %c3_i32 = arith.constant 3 : i32
    %0 = arith.muli %arg1, %c3_i32 : i32
    %1 = arith.addi %0, %arg2 : i32
    %c0_i32 = arith.constant 0 : i32
    %c0_i32_0 = arith.constant 0 : i32
    return %arg0, %c0_i32, %1 : i32, i32, i32
  }
  func.func @transform_9(%arg0: i32, %arg1: i32, %arg2: i32) -> (i32, i32, i32, i32) {
    %c0_i32 = arith.constant 0 : i32
    %c0_i32_0 = arith.constant 0 : i32
    %c0_i32_1 = arith.constant 0 : i32
    return %arg0, %arg1, %c0_i32, %c0_i32_0 : i32, i32, i32, i32
  }
}

</mosaic_0001>

<bundles_post_ra>
// kernel: loss7_forward.1
= control target key start
LH: loop header
LB: loop body
LE: loop exit
PB: predicated region body
PF: predicated region fallthrough
CT: control target
= control target key end

     0   :  { %s3578_s0 = inlined_call_operand.vmem [shape: f32[2,384,128], index: 0, kind: input, shape index: {}]   ;;  %s3579_s1 = inlined_call_operand.vmem [shape: f32[2,128,3], index: 1, kind: input, shape index: {}]   ;;  %s3580_s2 = inlined_call_operand.vmem [shape: f32[2,384,3], index: 2, kind: input, shape index: {}]   ;;  %s3581_s3 = inlined_call_operand.vmem [shape: f32[2,128,3], index: 3, kind: input, shape index: {}]   ;;  %s3582_s4 = inlined_call_operand.hbm [shape: f32[2,384,128], index: 4, kind: input, shape index: {}]   ;;  %s3583_s5 = inlined_call_operand.vmem [shape: f32[2,2,384], index: 5, kind: input, shape index: {}]   ;;  %s3584_s6 = inlined_call_operand.vmem [shape: f32[2,2,384], index: 6, kind: input, shape index: {}]   ;;  %s3585_s7 = inlined_call_operand.vmem [shape: f32[2,4,384], index: 7, kind: input, shape index: {}]   ;;  %s3586_s8 = inlined_call_operand.vmem [shape: s32[2,1,384], index: 8, kind: input, shape index: {}]   ;;  %s3587_s9 = inlined_call_operand.vmem [shape: f32[2,1,1,128], index: 9, kind: output, shape index: {}]  }
   0x1   :  { %3614 = sst [smem:[#allocation31_spill]] %s3583_s5 }
   0x2   :  { %3615 = sst [smem:[#allocation32_spill]] %s3584_s6 }
   0x3   :  { %3616 = sst [smem:[#allocation33_spill]] %s3585_s7 }
   0x4   :  { %14 = vsyncpa [#allocation3], 0 }
   0x5   :  { %16 = vsyncpa [#allocation3 + $0x1], 0  ;;  %s2530_s30 = smov 0   ;;  %s2532_s10 = smov 0  }
   0x6   :  { %s2534_s11 = smov 0   ;;  %s2536_s12 = smov 0  }
   0x7   :  { %s2538_s13 = smov 0   ;;  %s2540_s14 = smov 0  }
   0x8   :  { %s2542_s15 = smov 0   ;;  %s2544_s16 = smov 0  }
   0x9 LB: > { %3617 = sst [smem:[#allocation5_spill]] %s2467_s14  ;;  %s2064_s17 = sadd.s32 4294967295, %s2475_s16   ;;  %s2475_s16 = sphi %s2544_s16, %s22_s16   ;;  %s2471_s15 = sphi %s2542_s15, %s3717_s15   ;;  %s2467_s14 = sphi %s2540_s14, %s3711_s14   ;;  %s2463_s13 = sphi %s2538_s13, %s3716_s13   ;;  %s2459_s12 = sphi %s2536_s12, %s3710_s12   ;;  %s2455_s11 = sphi %s2534_s11, %s3715_s11   ;;  %s2451_s10 = sphi %s2532_s10, %s3714_s10   ;;  %s2447_s30 = sphi %s2530_s30, %s3713_s30  }
   0xa   : > { %s34_s18 = sadd.s32 1, %s2467_s14  ;;  %s41_s19 = sadd.s32 1, %s2471_s15 }
   0xb   : > { %p35_p0 = scmp.ge.s32.totalorder %s34_s18, 3  ;;  %s170_s20 = sadd.s32 1, %s2455_s11 }
   0xc   : > { %p177_p1 = scmp.ne.s32.totalorder %s2455_s11, %s2451_s10  ;;  %p178_p2 = scmp.eq.s32.totalorder %s2475_s16, 0 }
   0xd   : > { %s3719_s18 = smov (%p35_p0, %s34_s18), 0  ;;  %s3721_s19 = smov (!%p35_p0, %s41_s19), %s2471_s15 }
   0xe   : > { %3618 = sst [smem:[#allocation6_spill]] %s3719_s18  ;;  %s166_s21 = ssub.s32 %s2467_s14, %s3719_s18 }
   0xf   : > { %p43_p3 = scmp.ge.s32.totalorder %s3721_s19, 2  ;;  %p183_p4 = scmp.ne.s32.totalorder %s2451_s10, %s2447_s30 }
  0x10   : > { %p2581_p5 = por %p178_p2, %p177_p1  ;;  %p184_p6 = scmp.eq.s32.totalorder %s2064_s17, 0 }
  0x11   : > { %s3723_s19 = smov (%p43_p3, %s3721_s19), 0  ;;  %p2178_p8 = scmp.lt.s32.totalorder %s2475_s16, 6 }
  0x12   : > { %3620 = sst [smem:[#allocation7_spill]] %s3723_s19  ;;  %p2587_p7 = por %p184_p6, %p183_p4 }
  0x13   : > { %s165_s24 = ssub.s32 %s2471_s15, %s3723_s19  ;;  %s413_s26 = sand.u32 1, %s2455_s11  }
  0x14   : > { %s167_s25 = sor.u32 %s166_s21, %s165_s24  ;;  %s2068_s27 = sshll.u32 %s413_s26, 7 }
  0x15   : > { %p168_p9 = scmp.eq.s32.totalorder %s167_s25, 0  ;;  %s2069_s28 = sshll.u32 %s2467_s14, 4 }
  0x16   : > { %s2155_s30 = smul.u32 48, %s2471_s15  ;;  %s417_s17 = scalar_lea.vmem [#allocation2], %s2068_s27 }
  0x17   : > { %s2597_s29 = scalar_select %p168_p9, %s2455_s11, %s170_s20  }
  0x18   : > { %s429_s18 = sshll.u32 %s417_s17, 4  ;;  %p2175_p10 = pnand %p2178_p8, %p2581_p5  ;;  %s430_s18 = int_to_ptr.vmem [resolvable:$true] %s429_s18 }
  0x19   : > { %s424_s6 = sadd.s32 %s2155_s30, %s2069_s28  ;;  %p2071_p11 = scmp.ge.s32.totalorder %s2475_s16, 1 }
  0x1a   : > { %s2070_s5 = sshll.u32 %s424_s6, 3  ;;  %s414_s25 = scalar_lea.sflag [#allocation3], %s413_s26 }
  0x1b   : > { %s426_s21 = scalar_lea.hbm %s3582_s4, %s2070_s5  ;;  %s2477_s14 = smov 128  }
  0x1c   : > { %s427_s24 = sshll.u32 %s426_s21, 4  ;;  %s2478_s20 = smov 8   ;;  %s428_s24 = int_to_ptr.hbm [resolvable:$true] %s427_s24 }
  0x1d   : > { %2177 = dma.hbm_to_vmem [thread:$0]  (!%p2175_p10), %s428_s24, 2048, %s430_s18, %s414_s25, %s2477_s14, %s2477_s14, %s2478_s20  }
  0x1e   : > { %p496_p12 = scmp.lt.s32.totalorder %s2475_s16, 7 }
  0x20   : > { %p497_p13 = pnand %p2071_p11, %p496_p12 }
  0x22   : > { %500 = sbr.rel (%p497_p13) target bundleno = 954 (0x3ba), region = 56 }
  0x27   : > { %s502_s22 = sand.u32 1, %s2451_s10  }
  0x28   : > { %s2072_s27 = sshll.u32 %s502_s22, 7  ;;  %s503_s28 = scalar_lea.sflag [#allocation3], %s502_s22 }
  0x29   : > { %s2608_s6 = scalar_lea.vmem [#allocation2], %s2072_s27 }
  0x2a   : > { %2442 = dma.done.wait (%p2587_p7), %s503_s28, 2048  }
  0x2b   : > { %2444 = vsyncadd (%p2587_p7), %s503_s28, 4294965248  ;;  %s2073_s5 = sshll.u32 %s2459_s12, 4  ;;  %p617_p0 = scmp.lt.s32.totalorder %s2463_s13, 1 }
  0x2c   : > { %p619_p1 = scmp.lt.s32.totalorder %s2073_s5, 47  ;;  %p659_p2 = scmp.lt.s32.totalorder %s2459_s12, 2 }
  0x2d   : > { %s3725_s13 = smov (!%p617_p0, %s2463_s13), 1  ;;  %s3691_s20 = sld [smem:[#allocation33_spill]] }
  0x2e   : > { %s3727_s5 = smov (!%p619_p1, %s2073_s5), 47  ;;  %s2156_s7 = smul.u32 48, %s3725_s13 }
  0x2f   : > { %s2624_s19 = scalar_lea.vmem %s3587_s9, %s3725_s13  ;;  %s2104_s24 = sshll.u32 %s3725_s13, 7 }
  0x30   : > { %s2626_s26 = sadd.s32 %s2156_s7, %s3727_s5  ;;  %s2679_s22 = scalar_lea.vmem %s3581_s3, %s2104_s24 }
  0x31   : > { %s2074_s23 = sshll.u32 %s2626_s26, 3  ;;  %s2717_s5 = scalar_lea.vmem %s3579_s1, %s2104_s24 }
  0x32   : > { %s2634_s21 = scalar_lea.vmem %s3578_s0, %s2074_s23  ;;  %v2730_v47 = vld [vmem:[%s2717_s5 + $0x78] sm:$0xff]  ;;  %v2733_v48 = vld [vmem:[%s2717_s5 + $0x70] sm:$0xff]  ;;  %v2736_v49 = vld [vmem:[%s2717_s5 + $0x68] sm:$0xff]  ;;  %s2157_s7 = smul.u32 3, %s3725_s13 }
  0x33   : > { %v712_v0 = vld [vmem:[%s2634_s21 + $0x20] sm:$0xff]  ;;  %v710_v1 = vld [vmem:[%s2634_s21 + $0x10] sm:$0xff]  ;;  %v713_v4 = vld [vmem:[%s2634_s21 + $0x28] sm:$0xff]  ;;  %3623 = vst [vmem:[#allocation9_spill] sm:$0xff] %v2730_v47  ;;  %v1426_v50 = vmul.f32 0.5, %v2730_v47  ;;  %v1425_v51 = vmul.f32 0.5, %v2733_v48  ;;  %s3403_s25 = scalar_lea.vmem %s3580_s2, %s2074_s23 }
  0x34   : > { %v708_v2 = vld [vmem:[%s2634_s21] sm:$0xff]  ;;  %784 = vmax.xlane.f32.xlu1 %v712_v0  ;;  %780 = vmax.xlane.f32.xlu2 %v710_v1  ;;  %v709_v5 = vld [vmem:[%s2634_s21 + $0x8] sm:$0xff]  ;;  %v711_v6 = vld [vmem:[%s2634_s21 + $0x18] sm:$0xff]  ;;  %3624 = vst [vmem:[#allocation10_spill] sm:$0xff] %v2733_v48  ;;  %v1424_v58 = vmul.f32 0.5, %v2736_v49  ;;  %s3693_s24 = sld [smem:[#allocation32_spill]] }
  0x35   : > { %776 = vmax.xlane.f32.xlu0 %v708_v2  ;;  %v716_v3 = vld [vmem:[%s2634_s21 + $0x40] sm:$0xff]  ;;  %v717_v8 = vld [vmem:[%s2634_s21 + $0x48] sm:$0xff]  ;;  %v2649_v10 = vld [vmem:[%s2634_s21 + $0x50] sm:$0xff]  ;;  %3625 = vst [vmem:[#allocation11_spill] sm:$0xff] %v2736_v49  ;;  %1427 = vmatpush.msra.mxu0 %v1426_v50  ;;  %p1724_p3 = scmp.eq.s32.totalorder %s2459_s12, 0  ;;  %p2100_p4 = scmp.ne.s32.totalorder %s2459_s12, 0 }
  0x36   : > { %v720_v7 = vld [vmem:[%s2634_s21 + $0x60] sm:$0xff]  ;;  %v2646_v9 = vld [vmem:[%s2634_s21 + $0x68] sm:$0xff]  ;;  %v2652_v11 = vld [vmem:[%s2634_s21 + $0x30] sm:$0xff]  ;;  %2107 = vmatpush.msra.mxu1 %v1426_v50  ;;  %2108 = vmatpush.msra.mxu2 %v1426_v50 }
  0x37   : > { %v2658_v12 = vld [vmem:[%s2634_s21 + $0x70] sm:$0xff]  ;;  %v2661_v13 = vld [vmem:[%s2634_s21 + $0x58] sm:$0xff]  ;;  %v2742_v55 = vld [vmem:[%s2717_s5 + $0x60] sm:$0xff]  ;;  %2109 = vmatpush.msra.mxu3 %v1426_v50  ;;  %1428 = vmatpush.msra.mxu0 %v1425_v51 }
  0x38   : > { %v2664_v14 = vld [vmem:[%s2634_s21 + $0x38] sm:$0xff]  ;;  %3626 = vst [vmem:[#allocation12_spill] sm:$0xff] %v2742_v55  ;;  %2110 = vmatpush.msra.mxu1 %v1425_v51  ;;  %v1423_v63 = vmul.f32 0.5, %v2742_v55  ;;  %2111 = vmatpush.msra.mxu2 %v1425_v51 }
  0x39   : > { %v2670_v15 = vld [vmem:[%s2634_s21 + $0x78] sm:$0xff]  ;;  %2112 = vmatpush.msra.mxu3 %v1425_v51  ;;  %1429 = vmatpush.msra.mxu0 %v1424_v58  ;;  %v2828_v51 = vld [vmem:[%s2717_s5 + $0x30] sm:$0xff] }
  0x3a   : > { %v2752_v60 = vld [vmem:[%s2717_s5 + $0x58] sm:$0xff]  ;;  %2113 = vmatpush.msra.mxu1 %v1424_v58  ;;  %2114 = vmatpush.msra.mxu2 %v1424_v58  ;;  %3638 = vst [vmem:[#allocation24_spill] sm:$0xff] %v2828_v51 }
  0x3b   : > { %3628 = vst [vmem:[#allocation14_spill] sm:$0xff] %v2752_v60  ;;  %1430 = vmatpush.msra.mxu0 %v1423_v63  ;;  %2115 = vmatpush.msra.mxu3 %v1424_v58 }
  0x3c   : > { %792 = vmax.xlane.f32.xlu1 %v716_v3  ;;  %786 = vmax.xlane.f32.xlu2 %v713_v4 }
  0x3d   : > { %778 = vmax.xlane.f32.xlu0 %v709_v5  ;;  %2116 = vmatpush.msra.mxu1 %v1423_v63 }
  0x3e   : > { %2117 = vmatpush.msra.mxu2 %v1423_v63  ;;  %2118 = vmatpush.msra.mxu3 %v1423_v63 }
  0x44   : > { %782 = vmax.xlane.f32.xlu2 %v711_v6  ;;  %800 = vmax.xlane.f32.xlu1 %v720_v7 }
  0x45   : > { %794 = vmax.xlane.f32.xlu0 %v717_v8 }
  0x4c   : > { %802 = vmax.xlane.f32.xlu2 %v2646_v9  ;;  %796 = vmax.xlane.f32.xlu1 %v2649_v10 }
  0x4d   : > { %788 = vmax.xlane.f32.xlu0 %v2652_v11 }
  0x54   : > { %804 = vmax.xlane.f32.xlu2 %v2658_v12  ;;  %798 = vmax.xlane.f32.xlu1 %v2661_v13 }
  0x55   : > { %790 = vmax.xlane.f32.xlu0 %v2664_v14 }
  0x5d   : > { %806 = vmax.xlane.f32.xlu0 %v2670_v15 }
  0xa7   : > { %v785_v16 = vpop.xlane.xlu1 %784  ;;  %v781_v17 = vpop.xlane.xlu2 %780 }
  0xa8   : > { %v2681_v18 = vsub.f32 %v712_v0, %v785_v16  ;;  %v777_v19 = vpop.xlane.xlu0 %776  ;;  %v2702_v34 = vsub.f32 %v710_v1, %v781_v17 }
  0xa9   : > { %v2683_v20 = vsub.f32 %v708_v2, %v777_v19 }
  0xaa   : > { %v832_v21 = vmul.f32 1.442695, %v2681_v18  ;;  %v828_v41 = vmul.f32 1.442695, %v2702_v34 }
  0xab   : > { %v824_v22 = vmul.f32 1.442695, %v2683_v20 }
  0xac   : > { %2247 = vpow2.f32 %v832_v21 }
  0xad   : > { %2249 = vpow2.f32 %v824_v22 }
  0xaf   : > { %v793_v23 = vpop.xlane.xlu1 %792  ;;  %v787_v24 = vpop.xlane.xlu2 %786 }
  0xb0   : > { %v2687_v25 = vsub.f32 %v716_v3, %v793_v23  ;;  %v2689_v26 = vsub.f32 %v713_v4, %v787_v24  ;;  %v779_v27 = vpop.xlane.xlu0 %778  ;;  %v2765_v3 = vld [vmem:[%s2717_s5 + $0x50] sm:$0xff] }
  0xb1   : > { %v2691_v28 = vsub.f32 %v709_v5, %v779_v27  ;;  %3630 = vst [vmem:[#allocation16_spill] sm:$0xff] %v2765_v3  ;;  %v1422_v5 = vmul.f32 0.5, %v2752_v60 }
  0xb2   : > { %v2693_v29 = vpop.eup %2247  ;;  %v840_v30 = vmul.f32 1.442695, %v2687_v25  ;;  %v834_v31 = vmul.f32 1.442695, %v2689_v26 }
  0xb3   : > { %v826_v32 = vmul.f32 1.442695, %v2691_v28  ;;  %864 = vadd.xlane.f32.xlu0 %v2693_v29  ;;  %v2699_v33 = vpop.eup %2249  ;;  %1431 = vmatpush.msra.mxu0 %v1422_v5 }
  0xb4   : > { %2251 = vpow2.f32 %v840_v30  ;;  %856 = vadd.xlane.f32.xlu1 %v2699_v33  ;;  %2119 = vmatpush.msra.mxu1 %v1422_v5 }
  0xb5   : > { %2253 = vpow2.f32 %v834_v31  ;;  %2120 = vmatpush.msra.mxu2 %v1422_v5  ;;  %2121 = vmatpush.msra.mxu3 %v1422_v5 }
  0xb6   : > { %2255 = vpow2.f32 %v826_v32 }
  0xb7   : > { %v783_v35 = vpop.xlane.xlu2 %782  ;;  %v801_v36 = vpop.xlane.xlu1 %800 }
  0xb8   : > { %v2704_v37 = vsub.f32 %v711_v6, %v783_v35  ;;  %v795_v38 = vpop.xlane.xlu0 %794  ;;  %v2722_v45 = vsub.f32 %v720_v7, %v801_v36  ;;  %v1421_v6 = vmul.f32 0.5, %v2765_v3  ;;  %v2816_v36 = vld [vmem:[%s2717_s5 + $0x48] sm:$0xff] }
  0xb9   : > { %v2706_v39 = vsub.f32 %v717_v8, %v795_v38  ;;  %3635 = vst [vmem:[#allocation21_spill] sm:$0xff] %v2816_v36  ;;  %v1420_v38 = vmul.f32 0.5, %v2816_v36 }
  0xba   : > { %v2708_v40 = vpop.eup %2251  ;;  %v830_v42 = vmul.f32 1.442695, %v2704_v37  ;;  %3622 = vst [vmem:[#allocation8_spill] sm:$0xff] %v2722_v45  ;;  %v848_v52 = vmul.f32 1.442695, %v2722_v45  ;;  %1432 = vmatpush.msra.mxu0 %v1421_v6  ;;  %2122 = vmatpush.msra.mxu1 %v1421_v6 }
  0xbb   : > { %v2719_v43 = vpop.eup %2253  ;;  %v842_v44 = vmul.f32 1.442695, %v2706_v39  ;;  %2123 = vmatpush.msra.mxu2 %v1421_v6  ;;  %2124 = vmatpush.msra.mxu3 %v1421_v6  ;;  %v2848_v6 = vld [vmem:[%s2717_s5 + $0x8] sm:$0xff] }
  0xbc   : > { %v2724_v46 = vpop.eup %2255  ;;  %2257 = vpow2.f32 %v830_v42  ;;  %866 = vadd.xlane.f32.xlu0 %v2719_v43  ;;  %872 = vadd.xlane.f32.xlu1 %v2708_v40  ;;  %3643 = vst [vmem:[#allocation29_spill] sm:$0xff] %v2848_v6 }
  0xbd   : > { %2259 = vpow2.f32 %v842_v44  ;;  %858 = vadd.xlane.f32.xlu2 %v2724_v46  ;;  %1433 = vmatpush.msra.mxu0 %v1420_v38  ;;  %v2824_v44 = vld [vmem:[%s2717_s5 + $0x38] sm:$0xff] }
  0xbe   : > { %2261 = vpow2.f32 %v828_v41  ;;  %v2820_v41 = vld [vmem:[%s2717_s5 + $0x40] sm:$0xff]  ;;  %2125 = vmatpush.msra.mxu1 %v1420_v38  ;;  %3637 = vst [vmem:[#allocation23_spill] sm:$0xff] %v2824_v44  ;;  %2126 = vmatpush.msra.mxu2 %v1420_v38  ;;  %v1418_v50 = vmul.f32 0.5, %v2824_v44 }
  0xbf   : > { %v803_v53 = vpop.xlane.xlu2 %802  ;;  %v797_v54 = vpop.xlane.xlu1 %796  ;;  %2263 = vpow2.f32 %v848_v52  ;;  %3636 = vst [vmem:[#allocation22_spill] sm:$0xff] %v2820_v41  ;;  %v1419_v42 = vmul.f32 0.5, %v2820_v41  ;;  %2127 = vmatpush.msra.mxu3 %v1420_v38  ;;  %v1417_v52 = vmul.f32 0.5, %v2828_v51 }
  0xc0   : > { %v2745_v56 = vsub.f32 %v2646_v9, %v803_v53  ;;  %v789_v57 = vpop.xlane.xlu0 %788  ;;  %v2762_v2 = vsub.f32 %v2649_v10, %v797_v54  ;;  %v2832_v53 = vld [vmem:[%s2717_s5 + $0x28] sm:$0xff] }
  0xc1   : > { %v2749_v59 = vsub.f32 %v2652_v11, %v789_v57  ;;  %1434 = vmatpush.msra.mxu0 %v1419_v42  ;;  %2128 = vmatpush.msra.mxu1 %v1419_v42  ;;  %3639 = vst [vmem:[#allocation25_spill] sm:$0xff] %v2832_v53  ;;  %v1416_v54 = vmul.f32 0.5, %v2832_v53  ;;  %v2836_v57 = vld [vmem:[%s2717_s5 + $0x20] sm:$0xff] }
  0xc2   : > { %3627 = vst [vmem:[#allocation13_spill] sm:$0xff] %v2745_v56  ;;  %v2754_v61 = vpop.eup %2257  ;;  %v850_v62 = vmul.f32 1.442695, %v2745_v56  ;;  %v844_v7 = vmul.f32 1.442695, %v2762_v2  ;;  %2129 = vmatpush.msra.mxu2 %v1419_v42  ;;  %2130 = vmatpush.msra.mxu3 %v1419_v42  ;;  %v1415_v58 = vmul.f32 0.5, %v2836_v57 }
  0xc3   : > { %v2758_v0 = vpop.eup %2259  ;;  %v836_v1 = vmul.f32 1.442695, %v2749_v59  ;;  %3629 = vst [vmem:[#allocation15_spill] sm:$0xff] %v2762_v2  ;;  %1435 = vmatpush.msra.mxu0 %v1418_v50  ;;  %2131 = vmatpush.msra.mxu1 %v1418_v50 }
  0xc4   : > { %v2767_v4 = vpop.eup %2261  ;;  %2265 = vpow2.f32 %v850_v62  ;;  %862 = vadd.xlane.f32.xlu0 %v2754_v61  ;;  %874 = vadd.xlane.f32.xlu1 %v2758_v0  ;;  %3640 = vst [vmem:[#allocation26_spill] sm:$0xff] %v2836_v57  ;;  %v2840_v62 = vld [vmem:[%s2717_s5 + $0x18] sm:$0xff] }
  0xc5   : > { %2267 = vpow2.f32 %v836_v1  ;;  %860 = vadd.xlane.f32.xlu2 %v2767_v4  ;;  %v2778_v11 = vpop.eup %2263  ;;  %2132 = vmatpush.msra.mxu2 %v1418_v50  ;;  %3641 = vst [vmem:[#allocation27_spill] sm:$0xff] %v2840_v62  ;;  %v1414_v63 = vmul.f32 0.5, %v2840_v62  ;;  %v2844_v1 = vld [vmem:[%s2717_s5 + $0x10] sm:$0xff] }
  0xc6   : > { %2269 = vpow2.f32 %v844_v7  ;;  %2133 = vmatpush.msra.mxu3 %v1418_v50  ;;  %1436 = vmatpush.msra.mxu0 %v1417_v52  ;;  %3642 = vst [vmem:[#allocation28_spill] sm:$0xff] %v2844_v1  ;;  %v1413_v5 = vmul.f32 0.5, %v2844_v1  ;;  %v1412_v7 = vmul.f32 0.5, %v2848_v6 }
  0xc7   : > { %v805_v8 = vpop.xlane.xlu2 %804  ;;  %v799_v17 = vpop.xlane.xlu1 %798  ;;  %2134 = vmatpush.msra.mxu1 %v1417_v52  ;;  %2135 = vmatpush.msra.mxu2 %v1417_v52 }
  0xc8   : > { %v2776_v9 = vsub.f32 %v2658_v12, %v805_v8  ;;  %v791_v10 = vpop.xlane.xlu0 %790  ;;  %2136 = vmatpush.msra.mxu3 %v1417_v52  ;;  %1437 = vmatpush.msra.mxu0 %v1416_v54  ;;  %v2852_v8 = vld [vmem:[%s2717_s5] sm:$0xff] }
  0xc9   : > { %v2781_v16 = vsub.f32 %v2664_v14, %v791_v10  ;;  %v2791_v14 = vsub.f32 %v2661_v13, %v799_v17  ;;  %2137 = vmatpush.msra.mxu1 %v1416_v54  ;;  %2138 = vmatpush.msra.mxu2 %v1416_v54  ;;  %3644 = vst [vmem:[#allocation30_spill] sm:$0xff] %v2852_v8  ;;  %v1411_v10 = vmul.f32 0.5, %v2852_v8  ;;  %v724_v17 = vld [vmem:[%s2608_s6] sm:$0xff] }
  0xca   : > { %3631 = vst [vmem:[#allocation17_spill] sm:$0xff] %v2776_v9  ;;  %v2783_v19 = vpop.eup %2265  ;;  %v852_v21 = vmul.f32 1.442695, %v2776_v9  ;;  %2139 = vmatpush.msra.mxu3 %v1416_v54  ;;  %1438 = vmatpush.msra.mxu0 %v1415_v58 }
  0xcb   : > { %v2786_v22 = vpop.eup %2267  ;;  %v838_v12 = vmul.f32 1.442695, %v2781_v16  ;;  %3632 = vst [vmem:[#allocation18_spill] sm:$0xff] %v2791_v14  ;;  %v846_v23 = vmul.f32 1.442695, %v2791_v14  ;;  %2140 = vmatpush.msra.mxu1 %v1415_v58  ;;  %2141 = vmatpush.msra.mxu2 %v1415_v58 }
  0xcc   : > { %2271 = vpow2.f32 %v852_v21  ;;  %882 = vadd.xlane.f32.xlu0 %v2783_v19  ;;  %868 = vadd.xlane.f32.xlu1 %v2786_v22  ;;  %v2796_v27 = vpop.eup %2269  ;;  %v1192_v21 = vmax.f32 %v724_v17, 1e-30 }
  0xcd   : > { %2273 = vpow2.f32 %v838_v12  ;;  %880 = vadd.xlane.f32.xlu2 %v2778_v11  ;;  %2142 = vmatpush.msra.mxu3 %v1415_v58 }
  0xce   : > { %2275 = vpow2.f32 %v846_v23  ;;  %1439 = vmatpush.msra.mxu0 %v1414_v63  ;;  %2143 = vmatpush.msra.mxu1 %v1414_v63 }
  0xcf   : > { %2144 = vmatpush.msra.mxu2 %v1414_v63  ;;  %2145 = vmatpush.msra.mxu3 %v1414_v63 }
  0xd0   : > { %v807_v24 = vpop.xlane.xlu0 %806  ;;  %1440 = vmatpush.msra.mxu0 %v1413_v5  ;;  %2146 = vmatpush.msra.mxu1 %v1413_v5 }
  0xd1   : > { %v2799_v30 = vsub.f32 %v2670_v15, %v807_v24  ;;  %2147 = vmatpush.msra.mxu2 %v1413_v5  ;;  %2148 = vmatpush.msra.mxu3 %v1413_v5  ;;  %v2857_v24 = vld [vmem:[%s2608_s6 + $0x8] sm:$0xff] }
  0xd2   : > { %v2801_v13 = vpop.eup %2271  ;;  %1441 = vmatpush.msra.mxu0 %v1412_v7  ;;  %2149 = vmatpush.msra.mxu1 %v1412_v7  ;;  %v1193_v50 = vmax.f32 %v2857_v24, 1e-30 }
  0xd3   : > { %3633 = vst [vmem:[#allocation19_spill] sm:$0xff] %v2799_v30  ;;  %v2803_v31 = vpop.eup %2273  ;;  %v854_v32 = vmul.f32 1.442695, %v2799_v30  ;;  %2150 = vmatpush.msra.mxu2 %v1412_v7  ;;  %2151 = vmatpush.msra.mxu3 %v1412_v7 }
  0xd4   : > { %884 = vadd.xlane.f32.xlu0 %v2801_v13  ;;  %870 = vadd.xlane.f32.xlu1 %v2803_v31  ;;  %v2809_v35 = vpop.eup %2275 }
  0xd5   : > { %2277 = vpow2.f32 %v854_v32  ;;  %876 = vadd.xlane.f32.xlu2 %v2796_v27  ;;  %1442 = vmatpush.msra.mxu0 %v1411_v10 }
  0xd6   : > { %2152 = vmatpush.msra.mxu1 %v1411_v10  ;;  %2153 = vmatpush.msra.mxu2 %v1411_v10  ;;  %2279 = vlog2.f32 %v1192_v21 }
  0xd7   : > { %2154 = vmatpush.msra.mxu3 %v1411_v10 }
  0xdb   : > { %v2811_v15 = vpop.eup %2277 }
  0xdc   : > { %3634 = vst [vmem:[#allocation20_spill] sm:$0xff] %v2811_v15  ;;  %886 = vadd.xlane.f32.xlu1 %v2811_v15  ;;  %v2280_v32 = vpop.eup %2279 }
  0xdd   : > { %878 = vadd.xlane.f32.xlu2 %v2809_v35  ;;  %v1209_v63 = vmul.f32 0.6931472, %v2280_v32 }
 0x126   : > { %v865_v12 = vpop.xlane.xlu0 %864 }
 0x127   : > { %2281 = vrcp.f32 %v865_v12  ;;  %v857_v23 = vpop.xlane.xlu1 %856  ;;  %v957_v38 = vand.u32 2147483647, %v865_v12  ;;  %v959_v42 = vand.u32 2147483648, %v865_v12  ;;  %vm953_vm0 = vweird.f32 %v865_v12 }
 0x128   : > { %2283 = vlog2.f32 %v865_v12  ;;  %v897_v52 = vand.u32 2147483647, %v857_v23  ;;  %v899_v54 = vand.u32 2147483648, %v857_v23  ;;  %vm893_vm1 = vweird.f32 %v857_v23 }
 0x129   : > { %2285 = vrcp.f32 %v857_v23  ;;  %vm2862_vm2 = vcmp.eq.f32.partialorder %v957_v38, 8.507059e+37  ;;  %v960_v48 = vor.u32 1.1754944e-38, %v959_v42  ;;  %v2876_v42 = vmul.f32 %v1209_v63, %v724_v17 }
 0x12a   : > { %2287 = vlog2.f32 %v857_v23  ;;  %vm2871_vm3 = vcmp.eq.f32.partialorder %v897_v52, 8.507059e+37  ;;  %v900_v41 = vor.u32 1.1754944e-38, %v899_v54 }
 0x12b   : > { %2289 = vlog2.f32 %v1193_v50 }
 0x12d   : > { %v2282_v58 = vpop.eup %2281 }
 0x12e   : > { %v2284_v5 = vpop.eup %2283  ;;  %v949_v7 = vmul.f32 %v2282_v58, %v865_v12  ;;  %vm954_vm4 = vweird.f32 %v2282_v58 }
 0x12f   : > { %v2286_v10 = vpop.eup %2285  ;;  %v2860_v21 = vpop.xlane.xlu0 %866  ;;  %v2882_v53 = vmul.f32 0.6931472, %v2284_v5  ;;  %vm955_vm6 = vmor %vm953_vm0, %vm954_vm4 }
 0x130   : > { %v2288_v49 = vpop.eup %2287  ;;  %v889_v55 = vmul.f32 %v2286_v10, %v857_v23  ;;  %v950_v60 = vsub.f32 1.0, %v949_v7  ;;  %v2866_v3 = vpop.xlane.xlu1 %872  ;;  %2291 = vrcp.f32 %v2860_v21  ;;  %vm894_vm5 = vweird.f32 %v2286_v10 }
 0x131   : > { %v2868_v36 = vpop.xlane.xlu2 %858  ;;  %2293 = vrcp.f32 %v2866_v3  ;;  %v1145_v38 = vmul.f32 0.6931472, %v2288_v49  ;;  %v972_v52 = vand.u32 2147483647, %v2860_v21  ;;  %v974_v49 = vand.u32 2147483648, %v2860_v21  ;;  %v2290_v63 = vpop.eup %2289  ;;  %vm2905_vm9 = vmor %vm893_vm1, %vm894_vm5 }
 0x132   : > { %v890_v50 = vsub.f32 1.0, %v889_v55  ;;  %2295 = vrcp.f32 %v2868_v36  ;;  %v951_v7 = vmul.f32 %v2282_v58, %v950_v60  ;;  %v914_v44 = vand.u32 2147483648, %v2868_v36 }
 0x133   : > { %v1176_v51 = vsub.f32 %v2683_v20, %v1145_v38  ;;  %v912_v62 = vand.u32 2147483647, %v2868_v36  ;;  %vm968_vm7 = vweird.f32 %v2860_v21  ;;  %vm1013_vm8 = vweird.f32 %v2866_v3 }
 0x134   : > { %v891_v54 = vmul.f32 %v2286_v10, %v890_v50  ;;  %v952_v57 = vadd.f32 %v2282_v58, %v951_v7  ;;  %v2890_v60 = vor.u32 1.1754944e-38, %v914_v44  ;;  %v975_v50 = vor.u32 1.1754944e-38, %v974_v49 }
 0x135   : > { %v2888_v55 = vmul.f32 %v1176_v51, %v724_v17  ;;  %v1017_v7 = vand.u32 2147483647, %v2866_v3  ;;  %vm908_vm10 = vweird.f32 %v2868_v36  ;;  %vm2913_vm12 = vcmp.eq.f32.partialorder %v972_v52, 8.507059e+37 }
 0x136   : > { %v2894_v20 = vpop.eup %2291  ;;  %v892_v5 = vadd.f32 %v2286_v10, %v891_v54  ;;  %v956_v38 = vsel %vm955_vm6, %v2282_v58, %v952_v57  ;;  %v1019_v58 = vand.u32 2147483648, %v2866_v3  ;;  %vm2934_vm13 = vcmp.eq.f32.partialorder %v912_v62, 8.507059e+37 }
 0x137   : > { %v2897_v1 = vpop.eup %2293  ;;  %v964_v12 = vmul.f32 %v2894_v20, %v2860_v21  ;;  %v2901_v17 = vpop.xlane.xlu0 %862  ;;  %v961_v54 = vsel %vm2862_vm2, %v960_v48, %v956_v38  ;;  %vm969_vm11 = vweird.f32 %v2894_v20  ;;  %vm2941_vm14 = vcmp.eq.f32.partialorder %v1017_v7, 8.507059e+37 }
 0x138   : > { %v2296_v49 = vpop.eup %2295  ;;  %v1009_v23 = vmul.f32 %v2897_v1, %v2866_v3  ;;  %v2922_v8 = vpop.xlane.xlu1 %874  ;;  %2297 = vrcp.f32 %v2901_v17  ;;  %v896_v47 = vsel %vm2905_vm9, %v2286_v10, %v892_v5  ;;  %v2928_v48 = vmul.f32 %v2693_v29, %v961_v54  ;;  %vm2957_vm1 = vmor %vm968_vm7, %vm969_vm11 }
 0x139   : > { %v2920_v6 = vpop.xlane.xlu2 %860  ;;  %v904_v52 = vmul.f32 %v2296_v49, %v2868_v36  ;;  %v965_v38 = vsub.f32 1.0, %v964_v12  ;;  %v901_v9 = vsel %vm2871_vm3, %v900_v41, %v896_v47  ;;  %vm909_vm15 = vweird.f32 %v2296_v49 }
 0x13a   : > { %2299 = vrcp.f32 %v2920_v6  ;;  %v1010_v56 = vsub.f32 1.0, %v1009_v23  ;;  %v1128_v10 = vmul.f32 %v2699_v33, %v901_v9  ;;  %1455 = vmatmul.f32.vlgmr.msra.gmra.mxu1 %v2928_v48  ;;  %vm1014_vm0 = vweird.f32 %v2897_v1  ;;  %vm910_vm5 = vmor %vm908_vm10, %vm909_vm15 }
 0x13b   : > { %2301 = vrcp.f32 %v2922_v8  ;;  %v905_v5 = vsub.f32 1.0, %v904_v52  ;;  %v966_v32 = vmul.f32 %v2894_v20, %v965_v38  ;;  %v1211_v12 = vmul.f32 0.6931472, %v2290_v63  ;;  %vm2980_vm3 = vmor %vm1013_vm8, %vm1014_vm0 }
 0x13c   : > { %1443 = vmatmul.f32.vlgmr.msra.gmra.mxu0 %v1128_v10  ;;  %v1321_v41 = vmul.f32 %v1176_v51, %v1128_v10  ;;  %v1011_v62 = vmul.f32 %v2897_v1, %v1010_v56  ;;  %2303 = vlog2.f32 %v2868_v36  ;;  %v1020_v7 = vor.u32 1.1754944e-38, %v1019_v58 }
 0x13d   : > { %v906_v33 = vmul.f32 %v2296_v49, %v905_v5  ;;  %v967_v9 = vadd.f32 %v2894_v20, %v966_v32  ;;  %v927_v44 = vand.u32 2147483647, %v2920_v6  ;;  %v1241_v63 = vmul.f32 %v1211_v12, %v2857_v24 }
 0x13e   : > { %v2951_v54 = vpop.eup %2297  ;;  %1337 = vadd.xlane.f32.xlu2 %v1321_v41  ;;  %v1012_v56 = vadd.f32 %v2897_v1, %v1011_v62  ;;  %vm923_vm2 = vweird.f32 %v2920_v6  ;;  %v929_v58 = vand.u32 2147483648, %v2920_v6  ;;  %vm1028_vm4 = vweird.f32 %v2922_v8 }
 0x13f   : > { %v2969_v47 = vmul.f32 %v2951_v54, %v2901_v17  ;;  %v2971_v52 = vpop.xlane.xlu0 %882  ;;  %v907_v38 = vadd.f32 %v2296_v49, %v906_v33  ;;  %v971_v10 = vsel %vm2957_vm1, %v2894_v20, %v967_v9  ;;  %vm3006_vm6 = vcmp.eq.f32.partialorder %v927_v44, 8.507059e+37 }
 0x140   : > { %v2965_v23 = vpop.eup %2299  ;;  %v2991_v12 = vpop.xlane.xlu1 %868  ;;  %2305 = vrcp.f32 %v2971_v52  ;;  %v976_v20 = vsel %vm2913_vm12, %v975_v50, %v971_v10  ;;  %v1016_v33 = vsel %vm2980_vm3, %v2897_v1, %v1012_v56  ;;  %vm938_vm12 = vweird.f32 %v2901_v17 }
 0x141   : > { %v2985_v32 = vpop.eup %2301  ;;  %v919_v41 = vmul.f32 %v2965_v23, %v2920_v6  ;;  %v2989_v62 = vpop.xlane.xlu2 %880  ;;  %v935_v51 = vsub.f32 1.0, %v2969_v47  ;;  %v911_v15 = vsel %vm910_vm5, %v2296_v49, %v907_v38  ;;  %v3015_v50 = vmul.f32 %v2719_v43, %v976_v20 }
 0x142   : > { %v1024_v9 = vmul.f32 %v2985_v32, %v2922_v8  ;;  %2307 = vrcp.f32 %v2989_v62  ;;  %v2304_v36 = vpop.eup %2303  ;;  %v916_v1 = vsel %vm2934_vm13, %v2890_v60, %v911_v15  ;;  %v1021_v49 = vsel %vm2941_vm14, %v1020_v7, %v1016_v33 }
 0x143   : > { %v920_v14 = vsub.f32 1.0, %v919_v41  ;;  %2309 = vrcp.f32 %v2991_v12  ;;  %v1129_v56 = vmul.f32 %v2724_v46, %v916_v1  ;;  %v1147_v44 = vmul.f32 0.6931472, %v2304_v36  ;;  %1458 = vmatmul.f32.gmra.mxu1 %v3015_v50 }
 0x144   : > { %v1025_v57 = vsub.f32 1.0, %v1024_v9  ;;  %v3022_v47 = vmul.f32 %v2708_v40, %v1021_v49  ;;  %v3025_v38 = vadd.f32 %v1241_v63, %v2876_v42  ;;  %vm924_vm7 = vweird.f32 %v2965_v23  ;;  %v3121_v9 = vld [vmem:[%s2608_s6 + $0x18] sm:$0xff] }
 0x145   : > { %v921_v30 = vmul.f32 %v2965_v23, %v920_v14  ;;  %1446 = vmatmul.f32.gmra.mxu0 %v1129_v56  ;;  %v1177_v43 = vsub.f32 %v2691_v28, %v1147_v44  ;;  %v930_v46 = vor.u32 1.1754944e-38, %v929_v58  ;;  %vm1029_vm8 = vweird.f32 %v2985_v32  ;;  %vm3052_vm9 = vmor %vm923_vm2, %vm924_vm7  ;;  %v726_v44 = vld [vmem:[%s2608_s6 + $0x10] sm:$0xff] }
 0x146   : > { %v1026_v15 = vmul.f32 %v2985_v32, %v1025_v57  ;;  %v3032_v60 = vpop.eup %2305  ;;  %1467 = vmatmul.f32.vlgmr.msra.gmra.mxu2 %v3022_v47  ;;  %v1032_v42 = vand.u32 2147483647, %v2922_v8  ;;  %v1034_v14 = vand.u32 2147483648, %v2922_v8  ;;  %2311 = vlog2.f32 %v2920_v6  ;;  %vm3084_vm11 = vmor %vm1028_vm4, %vm1029_vm8 }
 0x147   : > { %v922_v40 = vadd.f32 %v2965_v23, %v921_v30  ;;  %v3043_v28 = vmul.f32 %v3032_v60, %v2971_v52  ;;  %v1281_v7 = vmul.f32 %v1177_v43, %v2857_v24  ;;  %v1322_v63 = vmul.f32 %v1177_v43, %v1129_v56  ;;  %v3046_v58 = vpop.xlane.xlu0 %884 }
 0x148   : > { %v3039_v29 = vpop.eup %2307  ;;  %v1027_v5 = vadd.f32 %v2985_v32, %v1026_v15  ;;  %v3065_v33 = vpop.xlane.xlu1 %870  ;;  %2313 = vrcp.f32 %v3046_v58  ;;  %vm3071_vm10 = vcmp.eq.f32.partialorder %v1032_v42, 8.507059e+37  ;;  %v1035_v15 = vor.u32 1.1754944e-38, %v1034_v14  ;;  %v728_v42 = vld [vmem:[%s2608_s6 + $0x20] sm:$0xff] }
 0x149   : > { %v3057_v41 = vpop.eup %2309  ;;  %v3061_v20 = vmul.f32 %v3039_v29, %v2989_v62  ;;  %v3063_v24 = vpop.xlane.xlu2 %876  ;;  %v926_v6 = vsel %vm3052_vm9, %v2965_v23, %v922_v40  ;;  %v1296_v57 = vadd.f32 %v1281_v7, %v2888_v55  ;;  %1339 = vadd.xlane.f32.xlu0 %v1322_v63  ;;  %v1194_v40 = vmax.f32 %v726_v44, 1e-30 }
 0x14a   : > { %v979_v36 = vmul.f32 %v3057_v41, %v2991_v12  ;;  %2315 = vrcp.f32 %v3063_v24  ;;  %v931_v49 = vsel %vm3006_vm6, %v930_v46, %v926_v6  ;;  %v1031_v55 = vsel %vm3084_vm11, %v2985_v32, %v1027_v5 }
 0x14b   : > { %2317 = vrcp.f32 %v3065_v33  ;;  %v1130_v43 = vmul.f32 %v2767_v4, %v931_v49  ;;  %v1180_v63 = vsub.f32 %v2681_v18, %v2882_v53  ;;  %v1196_v10 = vmax.f32 %v728_v42, 1e-30 }
 0x14c   : > { %v980_v30 = vsub.f32 1.0, %v979_v36  ;;  %v2312_v7 = vpop.eup %2311  ;;  %v936_v45 = vmul.f32 %v2951_v54, %v935_v51  ;;  %v1036_v32 = vsel %vm3071_vm10, %v1035_v15, %v1031_v55  ;;  %2319 = vlog2.f32 %v1194_v40 }
 0x14d   : > { %1449 = vmatmul.f32.gmra.mxu0 %v1130_v43  ;;  %v1149_v46 = vmul.f32 0.6931472, %v2312_v7  ;;  %vm939_vm13 = vweird.f32 %v2951_v54  ;;  %v3108_v14 = vmul.f32 %v2758_v0, %v1036_v32  ;;  %2321 = vlog2.f32 %v1196_v10 }
 0x14e   : > { %v3105_v4 = vpop.eup %2313  ;;  %v3110_v18 = vmul.f32 %v1180_v63, %v728_v42  ;;  %v1325_v53 = vmul.f32 %v1180_v63, %v2928_v48  ;;  %v937_v36 = vadd.f32 %v2951_v54, %v936_v45  ;;  %v942_v0 = vand.u32 2147483647, %v2901_v17  ;;  %vm3144_vm14 = vmor %vm938_vm12, %vm939_vm13 }
 0x14f   : > { %v3117_v5 = vmul.f32 %v3105_v4, %v3046_v58  ;;  %v1178_v6 = vsub.f32 %v2702_v34, %v1149_v46  ;;  %1470 = vmatmul.f32.gmra.mxu2 %v3108_v14  ;;  %v944_v48 = vand.u32 2147483648, %v2901_v17  ;;  %2323 = vlog2.f32 %v2901_v17 }
 0x150   : > { %v3113_v51 = vpop.eup %2315  ;;  %v1195_v34 = vmax.f32 %v3121_v9, 1e-30  ;;  %v941_v32 = vsel %vm3144_vm14, %v2951_v54, %v937_v36  ;;  %vm943_vm15 = vcmp.eq.f32.partialorder %v942_v0, 8.507059e+37  ;;  %v981_v15 = vmul.f32 %v3057_v41, %v980_v30 }
 0x151   : > { %v3125_v23 = vpop.eup %2317  ;;  %v3129_v49 = vmul.f32 %v3113_v51, %v3063_v24  ;;  %v1282_v40 = vmul.f32 %v1178_v6, %v726_v44  ;;  %v1323_v7 = vmul.f32 %v1178_v6, %v1130_v43  ;;  %1345 = vadd.xlane.f32.xlu0 %v1325_v53  ;;  %v3148_v10 = vpop.xlane.xlu2 %878  ;;  %v945_v46 = vor.u32 1.1754944e-38, %v944_v48 }
 0x152   : > { %v3137_v55 = vmul.f32 %v3125_v23, %v3065_v33  ;;  %v3154_v43 = vpop.xlane.xlu1 %886  ;;  %v2320_v53 = vpop.eup %2319  ;;  %2325 = vlog2.f32 %v1195_v34  ;;  %vm983_vm0 = vweird.f32 %v2991_v12  ;;  %v982_v0 = vadd.f32 %v3057_v41, %v981_v15 }
 0x153   : > { %v1040_v45 = vsub.f32 1.0, %v3129_v49  ;;  %v1297_v17 = vadd.f32 %v1296_v57, %v1282_v40  ;;  %1341 = vadd.xlane.f32.xlu1 %v1323_v7  ;;  %v2322_v1 = vpop.eup %2321  ;;  %v1213_v56 = vmul.f32 0.6931472, %v2320_v53  ;;  %v946_v2 = vsel %vm943_vm15, %v945_v46, %v941_v32 }
 0x154   : > { %v995_v6 = vsub.f32 1.0, %v3137_v55  ;;  %2327 = vrcp.f32 %v3148_v10  ;;  %v1217_v54 = vmul.f32 0.6931472, %v2322_v1  ;;  %v1131_v36 = vmul.f32 %v2754_v61, %v946_v2 }
 0x155   : > { %2329 = vrcp.f32 %v3154_v43  ;;  %v2324_v48 = vpop.eup %2323  ;;  %v1242_v57 = vmul.f32 %v1213_v56, %v726_v44  ;;  %vm984_vm1 = vweird.f32 %v3057_v41  ;;  %v987_v30 = vand.u32 2147483647, %v2991_v12 }
 0x156   : > { %v989_v34 = vand.u32 2147483648, %v2991_v12  ;;  %v1244_v40 = vmul.f32 %v1217_v54, %v728_v42  ;;  %v1151_v7 = vmul.f32 0.6931472, %v2324_v48  ;;  %1452 = vmatmul.f32.gmra.mxu0 %v1131_v36  ;;  %vm985_vm2 = vmor %vm983_vm0, %vm984_vm1  ;;  %v3671_v1 = vsub.f32 1.0, %v3061_v20 }
 0x157   : > { %vm1073_vm3 = vweird.f32 %v2989_v62  ;;  %v1257_v2 = vadd.f32 %v3025_v38, %v1242_v57  ;;  %v986_v56 = vsel %vm985_vm2, %v3057_v41, %v982_v0  ;;  %vm988_vm4 = vcmp.eq.f32.partialorder %v987_v30, 8.507059e+37 }
 0x158   : > { %v1071_v61 = vmul.f32 %v3039_v29, %v3671_v1  ;;  %v990_v44 = vor.u32 1.1754944e-38, %v989_v34  ;;  %v2326_v15 = vpop.eup %2325  ;;  %v1179_v63 = vsub.f32 %v2704_v37, %v1151_v7  ;;  %vm1074_vm5 = vweird.f32 %v3039_v29  ;;  %v729_v34 = vld [vmem:[%s2608_s6 + $0x28] sm:$0xff] }
 0x159   : > { %v1077_v32 = vand.u32 2147483647, %v2989_v62  ;;  %v1215_v46 = vmul.f32 0.6931472, %v2326_v15  ;;  %v1079_v38 = vand.u32 2147483648, %v2989_v62  ;;  %2331 = vlog2.f32 %v2860_v21  ;;  %vm3192_vm6 = vmor %vm1073_vm3, %vm1074_vm5 }
 0x15a   : > { %v1072_v42 = vadd.f32 %v3039_v29, %v1071_v61  ;;  %v3176_v20 = vpop.eup %2327  ;;  %v991_v53 = vsel %vm988_vm4, %v990_v44, %v986_v56  ;;  %v1283_v54 = vmul.f32 %v1179_v63, %v3121_v9  ;;  %v1324_v37 = vmul.f32 %v1179_v63, %v1131_v36  ;;  %v730_v56 = vld [vmem:[%s2608_s6 + $0x30] sm:$0xff] }
 0x15b   : > { %v3180_v41 = vpop.eup %2329  ;;  %v3185_v0 = vmul.f32 %v3176_v20, %v3148_v10  ;;  %v3188_v48 = vmul.f32 %v2786_v22, %v991_v53  ;;  %v1243_v21 = vmul.f32 %v1215_v46, %v3121_v9  ;;  %vm1078_vm7 = vcmp.eq.f32.partialorder %v1077_v32, 8.507059e+37 }
 0x15c   : > { %v3199_v30 = vmul.f32 %v3180_v41, %v3154_v43  ;;  %v1076_v36 = vsel %vm3192_vm6, %v3039_v29, %v1072_v42  ;;  %v1298_v22 = vadd.f32 %v1297_v17, %v1283_v54  ;;  %1343 = vadd.xlane.f32.xlu2 %v1324_v37  ;;  %v1080_v1 = vor.u32 1.1754944e-38, %v1079_v38 }
 0x15d   : > { %v1055_v7 = vsub.f32 1.0, %v3185_v0  ;;  %1461 = vmatmul.f32.gmra.mxu1 %v3188_v48  ;;  %v1197_v61 = vmax.f32 %v729_v34, 1e-30  ;;  %v1258_v9 = vadd.f32 %v1257_v2, %v1243_v21  ;;  %2333 = vlog2.f32 %v2991_v12 }
 0x15e   : > { %v1115_v44 = vsub.f32 1.0, %v3199_v30  ;;  %v1198_v15 = vmax.f32 %v730_v56, 1e-30  ;;  %v1081_v63 = vsel %vm1078_vm7, %v1080_v1, %v1076_v36  ;;  %v1299_v29 = vadd.f32 %v1298_v22, %v3110_v18 }
 0x15f   : > { %2335 = vlog2.f32 %v1197_v61  ;;  %v996_v17 = vmul.f32 %v3125_v23, %v995_v6  ;;  %v2332_v42 = vpop.eup %2331  ;;  %v3215_v32 = vmul.f32 %v2778_v11, %v1081_v63  ;;  %v1259_v46 = vadd.f32 %v1258_v9, %v1244_v40 }
 0x160   : > { %2337 = vlog2.f32 %v1198_v15  ;;  %vm998_vm8 = vweird.f32 %v3065_v33  ;;  %v1155_v2 = vmul.f32 0.6931472, %v2332_v42  ;;  %vm999_vm9 = vweird.f32 %v3125_v23 }
 0x161   : > { %v997_v12 = vadd.f32 %v3125_v23, %v996_v17  ;;  %v1002_v53 = vand.u32 2147483647, %v3065_v33  ;;  %1479 = vmatmul.f32.vlgmr.msra.gmra.mxu3 %v3215_v32  ;;  %vm3222_vm10 = vmor %vm998_vm8, %vm999_vm9  ;;  %v1004_v11 = vand.u32 2147483648, %v3065_v33  ;;  %v1041_v55 = vmul.f32 %v3113_v51, %v1040_v45 }
 0x162   : > { %vm1043_vm11 = vweird.f32 %v3063_v24  ;;  %vm1044_vm12 = vweird.f32 %v3113_v51  ;;  %v1181_v6 = vsub.f32 %v2689_v26, %v1155_v2  ;;  %v1047_v38 = vand.u32 2147483647, %v3063_v24 }
 0x163   : > { %v1001_v40 = vsel %vm3222_vm10, %v3125_v23, %v997_v12  ;;  %vm1003_vm13 = vcmp.eq.f32.partialorder %v1002_v53, 8.507059e+37  ;;  %v2334_v54 = vpop.eup %2333  ;;  %v1005_v37 = vor.u32 1.1754944e-38, %v1004_v11  ;;  %v1042_v57 = vadd.f32 %v3113_v51, %v1041_v55  ;;  %vm1045_vm14 = vmor %vm1043_vm11, %vm1044_vm12  ;;  %v731_v55 = vld [vmem:[%s2608_s6 + $0x38] sm:$0xff] }
 0x164   : > { %v1049_v49 = vand.u32 2147483648, %v3063_v24  ;;  %v3676_v45 = vsub.f32 1.0, %v3043_v28  ;;  %v1285_v22 = vmul.f32 %v1181_v6, %v729_v34  ;;  %v1326_v26 = vmul.f32 %v1181_v6, %v3015_v50  ;;  %v3262_v6 = vld [vmem:[%s2608_s6 + $0x40] sm:$0xff] }
 0x165   : > { %v2336_v36 = vpop.eup %2335  ;;  %v1157_v1 = vmul.f32 0.6931472, %v2334_v54  ;;  %vm1048_vm15 = vcmp.eq.f32.partialorder %v1047_v38, 8.507059e+37  ;;  %v1006_v9 = vsel %vm1003_vm13, %v1005_v37, %v1001_v40  ;;  %v1046_v15 = vsel %vm1045_vm14, %v3113_v51, %v1042_v57  ;;  %v3273_v54 = vld [vmem:[%s2608_s6 + $0x48] sm:$0xff] }
 0x166   : > { %v1086_v21 = vmul.f32 %v3032_v60, %v3676_v45  ;;  %v2338_v23 = vpop.eup %2337  ;;  %v1219_v61 = vmul.f32 0.6931472, %v2336_v36  ;;  %v1050_v63 = vor.u32 1.1754944e-38, %v1049_v49  ;;  %1347 = vadd.xlane.f32.xlu1 %v1326_v26  ;;  %v1300_v17 = vadd.f32 %v1299_v29, %v1285_v22  ;;  %v3307_v26 = vld [vmem:[%s2608_s6 + $0x50] sm:$0xff] }
 0x167   : > { %v1182_v28 = vsub.f32 %v2749_v59, %v1157_v1  ;;  %v1221_v42 = vmul.f32 0.6931472, %v2338_v23  ;;  %v3248_v50 = vmul.f32 %v2803_v31, %v1006_v9  ;;  %vm1088_vm0 = vweird.f32 %v2971_v52  ;;  %v3313_v9 = vld [vmem:[%s2608_s6 + $0x58] sm:$0xff] }
 0x168   : > { %v1245_v2 = vmul.f32 %v1219_v61, %v729_v34  ;;  %v1051_v12 = vsel %vm1048_vm15, %v1050_v63, %v1046_v15  ;;  %v1087_v53 = vadd.f32 %v3032_v60, %v1086_v21  ;;  %vm1089_vm1 = vweird.f32 %v3032_v60 }
 0x169   : > { %v1246_v18 = vmul.f32 %v1221_v42, %v730_v56  ;;  %v1286_v11 = vmul.f32 %v1182_v28, %v730_v56  ;;  %v1327_v51 = vmul.f32 %v1182_v28, %v3188_v48  ;;  %1464 = vmatmul.f32.gmra.mxu1 %v3248_v50  ;;  %v3255_v59 = vmul.f32 %v2796_v27, %v1051_v12  ;;  %vm1090_vm2 = vmor %vm1088_vm0, %vm1089_vm1 }
 0x16a   : > { %v1260_v29 = vadd.f32 %v1259_v46, %v1245_v2  ;;  %v1092_v31 = vand.u32 2147483647, %v2971_v52  ;;  %v1094_v34 = vand.u32 2147483648, %v2971_v52  ;;  %2339 = vlog2.f32 %v3065_v33 }
 0x16b   : > { %v3264_v40 = vadd.f32 %v1300_v17, %v1286_v11  ;;  %1349 = vadd.xlane.f32.xlu2 %v1327_v51  ;;  %1473 = vmatmul.f32.gmra.mxu2 %v3255_v59  ;;  %v1199_v27 = vmax.f32 %v731_v55, 1e-30  ;;  %v1200_v48 = vmax.f32 %v3262_v6, 1e-30  ;;  %v1091_v46 = vsel %vm1090_vm2, %v3032_v60, %v1087_v53 }
 0x16c   : > { %v1261_v56 = vadd.f32 %v1260_v29, %v1246_v18  ;;  %vm1093_vm3 = vcmp.eq.f32.partialorder %v1092_v31, 8.507059e+37  ;;  %v1095_v38 = vor.u32 1.1754944e-38, %v1094_v34  ;;  %v1201_v37 = vmax.f32 %v3273_v54, 1e-30 }
 0x16d   : > { %2341 = vlog2.f32 %v1199_v27  ;;  %v1056_v57 = vmul.f32 %v3176_v20, %v1055_v7  ;;  %vm1058_vm4 = vweird.f32 %v3148_v10  ;;  %vm1059_vm5 = vweird.f32 %v3176_v20 }
 0x16e   : > { %v1096_v33 = vsel %vm1093_vm3, %v1095_v38, %v1091_v46  ;;  %2343 = vlog2.f32 %v2866_v3  ;;  %v1062_v60 = vand.u32 2147483647, %v3148_v10  ;;  %v1064_v0 = vand.u32 2147483648, %v3148_v10  ;;  %vm3289_vm6 = vmor %vm1058_vm4, %vm1059_vm5 }
 0x16f   : > { %v3284_v49 = vmul.f32 %v2783_v19, %v1096_v33  ;;  %2345 = vlog2.f32 %v1200_v48  ;;  %v1057_v45 = vadd.f32 %v3176_v20, %v1056_v57  ;;  %v3681_v21 = vsub.f32 1.0, %v3117_v5 }
 0x170   : > { %2347 = vlog2.f32 %v2922_v8  ;;  %vm3293_vm7 = vcmp.eq.f32.partialorder %v1062_v60, 8.507059e+37  ;;  %vm1103_vm8 = vweird.f32 %v3046_v58  ;;  %v2340_v36 = vpop.eup %2339  ;;  %v1065_v22 = vor.u32 1.1754944e-38, %v1064_v0 }
 0x171   : > { %v1101_v19 = vmul.f32 %v3105_v4, %v3681_v21  ;;  %1482 = vmatmul.f32.gmra.mxu3 %v3284_v49  ;;  %2349 = vlog2.f32 %v1201_v37  ;;  %v1061_v8 = vsel %vm3289_vm6, %v3176_v20, %v1057_v45  ;;  %vm1104_vm9 = vweird.f32 %v3105_v4  ;;  %v3685_v20 = vld [vmem:[#allocation18_spill] sm:$0xff] }
 0x172   : > { %v1159_v1 = vmul.f32 0.6931472, %v2340_v36  ;;  %v1107_v23 = vand.u32 2147483647, %v3046_v58  ;;  %v1109_v61 = vand.u32 2147483648, %v3046_v58  ;;  %v1066_v63 = vsel %vm3293_vm7, %v1065_v22, %v1061_v8  ;;  %vm3319_vm10 = vmor %vm1103_vm8, %vm1104_vm9 }
 0x173   : > { %v1102_v5 = vadd.f32 %v3105_v4, %v1101_v19  ;;  %v2342_v15 = vpop.eup %2341  ;;  %2351 = vlog2.f32 %v3063_v24  ;;  %v1202_v17 = vmax.f32 %v3307_v26, 1e-30  ;;  %v1203_v28 = vmax.f32 %v3313_v9, 1e-30 }
 0x174   : > { %v2344_v42 = vpop.eup %2343  ;;  %v1183_v2 = vsub.f32 %v2781_v16, %v1159_v1  ;;  %v1223_v12 = vmul.f32 0.6931472, %v2342_v15  ;;  %v3328_v53 = vmul.f32 %v2809_v35, %v1066_v63  ;;  %vm1108_vm11 = vcmp.eq.f32.partialorder %v1107_v23, 8.507059e+37  ;;  %v737_v15 = vld [vmem:[%s2608_s6 + $0x68] sm:$0xff] }
 0x175   : > { %v1106_v18 = vsel %vm3319_vm10, %v3105_v4, %v1102_v5  ;;  %v2346_v11 = vpop.eup %2345  ;;  %v1161_v51 = vmul.f32 0.6931472, %v2344_v42  ;;  %v1110_v29 = vor.u32 1.1754944e-38, %v1109_v61  ;;  %2353 = vlog2.f32 %v1202_v17 }
 0x176   : > { %v2348_v24 = vpop.eup %2347  ;;  %v1247_v31 = vmul.f32 %v1223_v12, %v731_v55  ;;  %v1287_v34 = vmul.f32 %v1183_v2, %v731_v55  ;;  %v1328_v27 = vmul.f32 %v1183_v2, %v3248_v50  ;;  %v1225_v48 = vmul.f32 0.6931472, %v2346_v11  ;;  %1476 = vmatmul.f32.gmra.mxu2 %v3328_v53 }
 0x177   : > { %v2350_v16 = vpop.eup %2349  ;;  %v1184_v35 = vsub.f32 %v2687_v25, %v1161_v51  ;;  %v1163_v46 = vmul.f32 0.6931472, %v2348_v24  ;;  %v1111_v38 = vsel %vm1108_vm11, %v1110_v29, %v1106_v18  ;;  %2355 = vlog2.f32 %v3148_v10  ;;  %v738_v51 = vld [vmem:[%s2608_s6 + $0x70] sm:$0xff] }
 0x178   : > { %v1262_v4 = vadd.f32 %v1261_v56, %v1247_v31  ;;  %1351 = vadd.xlane.f32.xlu0 %v1328_v27  ;;  %v1302_v37 = vadd.f32 %v3264_v40, %v1287_v34  ;;  %v1248_v57 = vmul.f32 %v1225_v48, %v3262_v6  ;;  %v1227_v33 = vmul.f32 0.6931472, %v2350_v16  ;;  %v3686_v31 = vld [vmem:[#allocation8_spill] sm:$0xff]  ;;  %v739_v48 = vld [vmem:[%s2608_s6 + $0x78] sm:$0xff] }
 0x179   : > { %v2352_v55 = vpop.eup %2351  ;;  %v1288_v50 = vmul.f32 %v1184_v35, %v3262_v6  ;;  %v1329_v60 = vmul.f32 %v1184_v35, %v3022_v47  ;;  %v1185_v45 = vsub.f32 %v2706_v39, %v1163_v46  ;;  %v3343_v25 = vmul.f32 %v2801_v13, %v1111_v38  ;;  %v3350_v47 = vld [vmem:[%s2608_s6 + $0x60] sm:$0xff]  ;;  %v3684_v13 = vld [vmem:[#allocation15_spill] sm:$0xff]  ;;  %s660_s6 = scalar_select %p659_p2, %s2459_s12, 2 }
 0x17a   : > { %v1263_v0 = vadd.f32 %v1262_v4, %v1248_v57  ;;  %v1249_v10 = vmul.f32 %v1227_v33, %v3273_v54  ;;  %v1165_v56 = vmul.f32 0.6931472, %v2352_v55  ;;  %2357 = vlog2.f32 %v1203_v28 }
 0x17b   : > { %v2354_v40 = vpop.eup %2353  ;;  %1353 = vadd.xlane.f32.xlu1 %v1329_v60  ;;  %v1303_v7 = vadd.f32 %v1302_v37, %v1288_v50  ;;  %v1289_v3 = vmul.f32 %v1185_v45, %v3273_v54  ;;  %v1330_v21 = vmul.f32 %v1185_v45, %v3108_v14  ;;  %1485 = vmatmul.f32.gmra.mxu3 %v3343_v25  ;;  %2359 = vlog2.f32 %v2989_v62  ;;  %s3392_s14 = sadd.s32 %s2157_s7, %s660_s6  ;;  %s3692_s7 = sld [smem:[#allocation31_spill]] }
 0x17c   : > { %v1264_v39 = vadd.f32 %v1263_v0, %v1249_v10  ;;  %v1186_v6 = vsub.f32 %v3684_v13, %v1165_v56  ;;  %v1229_v19 = vmul.f32 0.6931472, %v2354_v40  ;;  %v1204_v36 = vmax.f32 %v3350_v47, 1e-30  ;;  %v3688_v56 = vld [vmem:[#allocation13_spill] sm:$0xff]  ;;  %s699_s17 = scalar_lea.vmem %s3586_s8, %s3392_s14  ;;  %s2083_s13 = sshll.u32 %s3392_s14, 2 }
 0x17d   : > { %v2356_v8 = vpop.eup %2355  ;;  %v1304_v22 = vadd.f32 %v1303_v7, %v1289_v3  ;;  %1355 = vadd.xlane.f32.xlu2 %v1330_v21  ;;  %v1116_v14 = vmul.f32 %v3180_v41, %v1115_v44  ;;  %vm1118_vm12 = vweird.f32 %v3154_v43  ;;  %vm1119_vm13 = vweird.f32 %v3180_v41  ;;  %v3689_v3 = vld [vmem:[#allocation19_spill] sm:$0xff]  ;;  %s688_s27 = scalar_lea.vmem %s3691_s20, %s2083_s13  ;;  %s2081_s28 = sshll.u32 %s3392_s14, 1 }
 0x17e   : > { %v1250_v62 = vmul.f32 %v1229_v19, %v3307_v26  ;;  %v1290_v54 = vmul.f32 %v1186_v6, %v3307_v26  ;;  %v1331_v1 = vmul.f32 %v1186_v6, %v3255_v59  ;;  %v1167_v5 = vmul.f32 0.6931472, %v2356_v8  ;;  %vm1120_vm14 = vmor %vm1118_vm12, %vm1119_vm13  ;;  %v3690_v8 = vld [vmem:[#allocation17_spill] sm:$0xff]  ;;  %s676_s13 = scalar_lea.vmem %s3693_s24, %s2081_s28 }
 0x17f   : > { %2361 = vlog2.f32 %v1204_v36  ;;  %v1117_v23 = vadd.f32 %v3180_v41, %v1116_v14  ;;  %v1122_v61 = vand.u32 2147483647, %v3154_v43  ;;  %v1124_v30 = vand.u32 2147483648, %v3154_v43 }
 0x180   : > { %v2358_v44 = vpop.eup %2357  ;;  %1357 = vadd.xlane.f32.xlu0 %v1331_v1  ;;  %v1305_v63 = vadd.f32 %v1304_v22, %v1290_v54  ;;  %v1187_v17 = vsub.f32 %v3685_v20, %v1167_v5  ;;  %2363 = vlog2.f32 %v3154_v43  ;;  %v1205_v59 = vmax.f32 %v737_v15, 1e-30 }
 0x181   : > { %v2360_v26 = vpop.eup %2359  ;;  %v1231_v28 = vmul.f32 0.6931472, %v2358_v44  ;;  %v1121_v42 = vsel %vm1120_vm14, %v3180_v41, %v1117_v23  ;;  %vm1123_vm15 = vcmp.eq.f32.partialorder %v1122_v61, 8.507059e+37  ;;  %v1125_v2 = vor.u32 1.1754944e-38, %v1124_v30  ;;  %v3687_v41 = vld [vmem:[#allocation20_spill] sm:$0xff]  ;;  %s664_s18 = scalar_lea.vmem %s3692_s7, %s2081_s28 }
 0x182   : > { %v1291_v12 = vmul.f32 %v1187_v17, %v3313_v9  ;;  %v1332_v18 = vmul.f32 %v1187_v17, %v3328_v53  ;;  %v1169_v11 = vmul.f32 0.6931472, %v2360_v26  ;;  %2365 = vlog2.f32 %v2971_v52 }
 0x183   : > { %v1251_v29 = vmul.f32 %v1231_v28, %v3313_v9  ;;  %v1126_v24 = vsel %vm1123_vm15, %v1125_v2, %v1121_v42  ;;  %2367 = vlog2.f32 %v1205_v59  ;;  %v1206_v43 = vmax.f32 %v738_v51, 1e-30  ;;  %v741_v59 = vld [vmem:[%s3403_s25 + $0x8] sm:$0xff]  ;;  %v740_v28 = vld [vmem:[%s3403_s25] sm:$0xff]  ;;  %v742_v42 = vld [vmem:[%s3403_s25 + $0x10] sm:$0xff] }
 0x184   : > { %1359 = vadd.xlane.f32.xlu1 %v1332_v18  ;;  %v1188_v34 = vsub.f32 %v3686_v31, %v1169_v11  ;;  %v1143_v27 = vmul.f32 %v3687_v41, %v1126_v24  ;;  %2369 = vlog2.f32 %v3046_v58  ;;  %v1207_v35 = vmax.f32 %v739_v48, 1e-30  ;;  %v744_v11 = vld [vmem:[%s3403_s25 + $0x20] sm:$0xff] }
 0x185   : > { %v2362_v16 = vpop.eup %2361  ;;  %2371 = vlog2.f32 %v1206_v43  ;;  %v1265_v53 = vadd.f32 %v1264_v39, %v1250_v62  ;;  %v1306_v38 = vadd.f32 %v1305_v63, %v1291_v12  ;;  %v743_v43 = vld [vmem:[%s3403_s25 + $0x18] sm:$0xff]  ;;  %vm1369_vm0 = vcmask 7168  }
 0x186   : > { %v2364_v46 = vpop.eup %2363  ;;  %v1333_v52 = vmul.f32 %v1188_v34, %v3215_v32  ;;  %1488 = vmatmul.f32.gmra.mxu3 %v1143_v27  ;;  %v1233_v9 = vmul.f32 0.6931472, %v2362_v16  ;;  %2373 = vlog2.f32 %v1207_v35  ;;  %v1292_v58 = vmul.f32 %v1188_v34, %v3350_v47 }
 0x187   : > { %v1266_v4 = vadd.f32 %v1265_v53, %v1251_v29  ;;  %v1175_v57 = vmul.f32 0.6931472, %v2364_v46  ;;  %vm1604_vm1 = vcmask 23552   ;;  %vm1658_vm8 = vcmask 1043456  }
 0x188   : > { %v2366_v37 = vpop.eup %2365  ;;  %1361 = vadd.xlane.f32.xlu2 %v1333_v52  ;;  %v1252_v33 = vmul.f32 %v1233_v9, %v3350_v47  ;;  %v1307_v7 = vadd.f32 %v1306_v38, %v1292_v58  ;;  %vm1647_vm14 = vcmask 1041408  }
 0x189   : > { %v2368_v55 = vpop.eup %2367  ;;  %v1171_v50 = vmul.f32 0.6931472, %v2366_v37  ;;  %v1191_v21 = vsub.f32 %v3689_v3, %v1175_v57 }
 0x18a   : > { %v2370_v60 = vpop.eup %2369  ;;  %v1235_v45 = vmul.f32 0.6931472, %v2368_v55  ;;  %v1267_v0 = vadd.f32 %v1266_v4, %v1252_v33 }
 0x18b   : > { %v2372_v10 = vpop.eup %2371  ;;  %v1189_v32 = vsub.f32 %v3688_v56, %v1171_v50  ;;  %v1173_v40 = vmul.f32 0.6931472, %v2370_v60  ;;  %v1336_v22 = vmul.f32 %v1191_v21, %v1143_v27  ;;  %v1295_v44 = vmul.f32 %v1191_v21, %v739_v48  ;;  %v745_v27 = vld [vmem:[%s3403_s25 + $0x28] sm:$0xff] }
 0x18c   : > { %v1237_v39 = vmul.f32 0.6931472, %v2372_v10  ;;  %v1253_v13 = vmul.f32 %v1235_v45, %v737_v15  ;;  %v2374_v6 = vpop.eup %2373 }
 0x18d   : > { %v1293_v19 = vmul.f32 %v1189_v32, %v737_v15  ;;  %v1334_v36 = vmul.f32 %v1189_v32, %v3284_v49  ;;  %v1190_v47 = vsub.f32 %v3690_v8, %v1173_v40  ;;  %v1239_v14 = vmul.f32 0.6931472, %v2374_v6  ;;  %v746_v32 = vld [vmem:[%s3403_s25 + $0x30] sm:$0xff] }
 0x18e   : > { %v1254_v62 = vmul.f32 %v1237_v39, %v738_v51  ;;  %v1268_v54 = vadd.f32 %v1267_v0, %v1253_v13 }
 0x18f   : > { %1363 = vadd.xlane.f32.xlu0 %v1334_v36  ;;  %v1335_v1 = vmul.f32 %v1190_v47, %v3343_v25  ;;  %v1308_v5 = vadd.f32 %v1307_v7, %v1293_v19  ;;  %v1255_v23 = vmul.f32 %v1239_v14, %v739_v48  ;;  %v1294_v30 = vmul.f32 %v1190_v47, %v738_v51 }
 0x190   : > { %1367 = vadd.xlane.f32.xlu2 %v1336_v22  ;;  %v1269_v61 = vadd.f32 %v1268_v54, %v1254_v62 }
 0x191   : > { %1365 = vadd.xlane.f32.xlu1 %v1335_v1  ;;  %v1309_v15 = vadd.f32 %v1308_v5, %v1294_v30  ;;  %v749_v30 = vld [vmem:[%s3403_s25 + $0x48] sm:$0xff] }
 0x192   : > { %v1270_v49 = vadd.f32 %v1269_v61, %v1255_v23  ;;  %v748_v23 = vld [vmem:[%s3403_s25 + $0x40] sm:$0xff] }
 0x193   : > { %v1310_v63 = vadd.f32 %v1309_v15, %v1295_v44 }
 0x197   : > { %1271 = vadd.xlane.f32.xlu0 %v1270_v49 }
 0x199   : > { %1311 = vadd.xlane.f32.xlu1 %v1310_v63 }
 0x1b1   : > { %v1338_v16 = vpop.xlane.xlu2 %1337 }
 0x1b2   : > { %v1370_v0 = vsel %vm1369_vm0, %v1338_v16, 0.0 }
 0x1b7   : > { %v1456_v17 = vpop.f32.mrf.mxu1 }
 0x1b8   : > { %v1496_v31 = vsub.f32 %v1456_v17, %v744_v11  ;;  %v747_v11 = vld [vmem:[%s3403_s25 + $0x38] sm:$0xff] }
 0x1b9   : > { %v1444_v25 = vpop.f32.mrf.mxu0 }
 0x1ba   : > { %v1492_v12 = vsub.f32 %v1444_v25, %v740_v28  ;;  %v1512_v52 = vand.u32 2147483647, %v1496_v31 }
 0x1bc   : > { %v1508_v29 = vand.u32 2147483647, %v1492_v12  ;;  %v1340_v9 = vpop.xlane.xlu0 %1339  ;;  %v1560_v10 = vmul.f32 %v1512_v52, %v1512_v52  ;;  %v2088_v25 = vadd.f32 -0.005, %v1512_v52  ;;  %vm1528_vm6 = vcmp.gt.f32.partialorder %v1512_v52, 0.01 }
 0x1bd   : > { %v1371_v58 = vsel %vm1369_vm0, %v1340_v9, 0.0 }
 0x1be   : > { %v1556_v53 = vmul.f32 %v1508_v29, %v1508_v29  ;;  %v2084_v7 = vadd.f32 -0.005, %v1508_v29  ;;  %vm1524_vm3 = vcmp.gt.f32.partialorder %v1508_v29, 0.01  ;;  %v1372_v13 = vadd.f32 %v1371_v58, %v1370_v0 }
 0x1bf   : > { %v1576_v15 = vmul.f32 50.0, %v1560_v10 }
 0x1c0   : > { %v1459_v34 = vpop.f32.mrf.mxu1  ;;  %v1572_v55 = vmul.f32 50.0, %v1556_v53 }
 0x1c1   : > { %v1497_v38 = vsub.f32 %v1459_v34, %v745_v27 }
 0x1c2   : > { %v1447_v20 = vpop.f32.mrf.mxu0  ;;  %v1588_v36 = vsel %vm1524_vm3, %v2084_v7, %v1572_v55 }
 0x1c3   : > { %v1493_v2 = vsub.f32 %v1447_v20, %v741_v59  ;;  %v1513_v56 = vand.u32 2147483647, %v1497_v38  ;;  %v1605_v5 = vsel %vm1604_vm1, %v1588_v36, 0.0  ;;  %v3433_v38 = vld [vmem:[%s688_s27] sm:$0xf] }
 0x1c4   : > { %v1346_v59 = vpop.xlane.xlu0 %1345  ;;  %v1659_v55 = vsel %vm1658_vm8, %v3433_v38, -inf }
 0x1c5   : > { %v1509_v51 = vand.u32 2147483647, %v1493_v2  ;;  %v1561_v62 = vmul.f32 %v1513_v56, %v1513_v56  ;;  %v2089_v29 = vadd.f32 -0.005, %v1513_v56  ;;  %vm1529_vm7 = vcmp.gt.f32.partialorder %v1513_v56, 0.01 }
 0x1c6   : > { %v1342_v60 = vpop.xlane.xlu1 %1341  ;;  %v1377_v34 = vsel %vm1369_vm0, %v1346_v59, 0.0 }
 0x1c7   : > { %v1557_v41 = vmul.f32 %v1509_v51, %v1509_v51  ;;  %v2085_v50 = vadd.f32 -0.005, %v1509_v51  ;;  %vm1525_vm2 = vcmp.gt.f32.partialorder %v1509_v51, 0.01  ;;  %v1373_v6 = vsel %vm1369_vm0, %v1342_v60, 0.0 }
 0x1c8   : > { %v1374_v54 = vadd.f32 %v1373_v6, %v1372_v13  ;;  %v1577_v20 = vmul.f32 50.0, %v1561_v62  ;;  %v1592_v51 = vsel %vm1528_vm6, %v2088_v25, %v1576_v15  ;;  %vm1692_vm6 = vcmask 1040384  }
 0x1c9   : > { %v3411_v4 = vpop.f32.mrf.mxu2  ;;  %v1573_v57 = vmul.f32 50.0, %v1557_v41  ;;  %v1612_v52 = vsel %vm1604_vm1, %v1592_v51, 0.0 }
 0x1ca   : > { %v1450_v26 = vpop.f32.mrf.mxu0  ;;  %v1593_v16 = vsel %vm1529_vm7, %v2089_v29, %v1577_v20 }
 0x1cb   : > { %v1494_v18 = vsub.f32 %v1450_v26, %v742_v42  ;;  %v1589_v3 = vsel %vm1525_vm2, %v2085_v50, %v1573_v57  ;;  %v1500_v42 = vsub.f32 %v3411_v4, %v748_v23  ;;  %v1614_v58 = vsel %vm1604_vm1, %v1593_v16, 0.0  ;;  %v752_v23 = vld [vmem:[%s3403_s25 + $0x60] sm:$0xff] }
 0x1cc   : > { %v1606_v14 = vsel %vm1604_vm1, %v1589_v3, 0.0 }
 0x1cd   : > { %v1510_v24 = vand.u32 2147483647, %v1494_v18  ;;  %v1607_v44 = vadd.f32 %v1606_v14, %v1605_v5  ;;  %v1516_v53 = vand.u32 2147483647, %v1500_v42  ;;  %v753_v42 = vld [vmem:[%s3403_s25 + $0x68] sm:$0xff] }
 0x1cf   : > { %v1558_v46 = vmul.f32 %v1510_v24, %v1510_v24  ;;  %v2086_v21 = vadd.f32 -0.005, %v1510_v24  ;;  %v1344_v19 = vpop.xlane.xlu2 %1343  ;;  %vm1526_vm4 = vcmp.gt.f32.partialorder %v1510_v24, 0.01  ;;  %v1564_v0 = vmul.f32 %v1516_v53, %v1516_v53 }
 0x1d0   : > { %v1375_v17 = vsel %vm1369_vm0, %v1344_v19, 0.0  ;;  %vm1532_vm11 = vcmp.gt.f32.partialorder %v1516_v53, 0.01 }
 0x1d1   : > { %v1574_v45 = vmul.f32 50.0, %v1558_v46  ;;  %v1376_v28 = vadd.f32 %v1375_v17, %v1374_v54  ;;  %v1580_v54 = vmul.f32 50.0, %v1564_v0  ;;  %v2246_v0 = vld [vmem:[%s699_s17] ss:$0 sm:$0xff] }
 0x1d2   : > { %v1471_v49 = vpop.f32.mrf.mxu2 }
 0x1d3   : > { %v1453_v48 = vpop.f32.mrf.mxu0  ;;  %v1590_v8 = vsel %vm1526_vm4, %v2086_v21, %v1574_v45  ;;  %v1501_v18 = vsub.f32 %v1471_v49, %v749_v30  ;;  %v1660_v45 = vrot.slane %v1659_v55, 4 }
 0x1d4   : > { %v1495_v35 = vsub.f32 %v1453_v48, %v743_v43  ;;  %v1608_v61 = vsel %vm1604_vm1, %v1590_v8, 0.0 }
 0x1d5   : > { %v1609_v2 = vadd.f32 %v1608_v61, %v1607_v44  ;;  %v1517_v46 = vand.u32 2147483647, %v1501_v18  ;;  %v1661_v21 = vmax.f32 %v1659_v55, %v1660_v45  ;;  %v2092_v44 = vadd.f32 -0.005, %v1516_v53 }
 0x1d6   : > { %v1511_v37 = vand.u32 2147483647, %v1495_v35  ;;  %v1378_v35 = vadd.f32 %v1377_v34, %v1376_v28 }
 0x1d7   : > { %v1565_v56 = vmul.f32 %v1517_v46, %v1517_v46  ;;  %v2093_v17 = vadd.f32 -0.005, %v1517_v46  ;;  %v1596_v18 = vsel %vm1532_vm11, %v2092_v44, %v1580_v54  ;;  %vm1533_vm12 = vcmp.gt.f32.partialorder %v1517_v46, 0.01 }
 0x1d8   : > { %v1559_v33 = vmul.f32 %v1511_v37, %v1511_v37  ;;  %v2087_v22 = vadd.f32 -0.005, %v1511_v37  ;;  %vm1527_vm5 = vcmp.gt.f32.partialorder %v1511_v37, 0.01  ;;  %v1620_v53 = vsel %vm1604_vm1, %v1596_v18, 0.0 }
 0x1d9   : > { %v1348_v12 = vpop.xlane.xlu1 %1347  ;;  %v1581_v49 = vmul.f32 50.0, %v1565_v56  ;;  %v1679_v56 = vlaneseq }
 0x1da   : > { %v1462_v40 = vpop.f32.mrf.mxu1  ;;  %v1575_v39 = vmul.f32 50.0, %v1559_v33  ;;  %v1379_v41 = vsel %vm1369_vm0, %v1348_v12, 0.0 }
 0x1db   : > { %v1498_v47 = vsub.f32 %v1462_v40, %v746_v32  ;;  %v1380_v4 = vadd.f32 %v1379_v41, %v1378_v35  ;;  %v750_v40 = vld [vmem:[%s3403_s25 + $0x50] sm:$0xff]  ;;  %v751_v41 = vld [vmem:[%s3403_s25 + $0x58] sm:$0xff] }
 0x1dc   : > { %v1591_v1 = vsel %vm1527_vm5, %v2087_v22, %v1575_v39 }
 0x1dd   : > { %v1514_v63 = vand.u32 2147483647, %v1498_v47  ;;  %v1610_v26 = vsel %vm1604_vm1, %v1591_v1, 0.0  ;;  %v1662_v47 = vrot.slane %v1661_v21, 2 }
 0x1de   : > { %v1611_v43 = vadd.f32 %v1610_v26, %v1609_v2  ;;  %v1350_v27 = vpop.xlane.xlu2 %1349 }
 0x1df   : > { %v1562_v24 = vmul.f32 %v1514_v63, %v1514_v63  ;;  %v1381_v10 = vsel %vm1369_vm0, %v1350_v27, 0.0  ;;  %v2090_v32 = vadd.f32 -0.005, %v1514_v63  ;;  %vm1530_vm9 = vcmp.gt.f32.partialorder %v1514_v63, 0.01 }
 0x1e0   : > { %v1613_v57 = vadd.f32 %v1612_v52, %v1611_v43  ;;  %v1382_v39 = vadd.f32 %v1381_v10, %v1380_v4  ;;  %v1663_v30 = vmax.f32 %v1661_v21, %v1662_v47 }
 0x1e1   : > { %v1578_v37 = vmul.f32 50.0, %v1562_v24 }
 0x1e2   : > { %v1615_v19 = vadd.f32 %v1614_v58, %v1613_v57  ;;  %v1664_v12 = vrot.slane %v1663_v30, 1  ;;  %v773_v58 = vld [vmem:[%s676_s13] sm:$0x3] }
 0x1e3   : > { %v1594_v13 = vsel %vm1530_vm9, %v2090_v32, %v1578_v37 }
 0x1e4   : > { %v1480_v33 = vpop.f32.mrf.mxu3  ;;  %v1616_v1 = vsel %vm1604_vm1, %v1594_v13, 0.0  ;;  %v3450_v24 = vmax.f32 %v1663_v30, %v1664_v12  ;;  %v1680_v13 = vshrl.u32 %v1679_v56, 7 }
 0x1e5   : > { %v1617_v15 = vadd.f32 %v1616_v1, %v1615_v19  ;;  %v1504_v26 = vsub.f32 %v1480_v33, %v752_v23 }
 0x1e6   : > { %v1465_v31 = vpop.f32.mrf.mxu1  ;;  %v1666_v35 = vsub.f32 %v3433_v38, %v3450_v24  ;;  %vm1682_vm15 = vcmp.eq.s32.totalorder %v1680_v13, %v2246_v0 }
 0x1e7   : > { %v1499_v48 = vsub.f32 %v1465_v31, %v747_v11  ;;  %v1597_v11 = vsel %vm1533_vm12, %v2093_v17, %v1581_v49  ;;  %v1520_v27 = vand.u32 2147483647, %v1504_v26  ;;  %v1683_v23 = vsel %vm1682_vm15, %v3433_v38, 0.0 }
 0x1e8   : > { %v1622_v46 = vsel %vm1604_vm1, %v1597_v11, 0.0  ;;  %v1667_v10 = vmul.f32 1.442695, %v1666_v35 }
 0x1e9   : > { %v1515_v9 = vand.u32 2147483647, %v1499_v48  ;;  %v2096_v32 = vadd.f32 -0.005, %v1520_v27  ;;  %vm1536_vm3 = vcmp.gt.f32.partialorder %v1520_v27, 0.01 }
 0x1ea   : > { %2375 = vpow2.f32 %v1667_v10 }
 0x1eb   : > { %v1352_v50 = vpop.xlane.xlu0 %1351  ;;  %v1563_v60 = vmul.f32 %v1515_v9, %v1515_v9  ;;  %v2091_v6 = vadd.f32 -0.005, %v1515_v9  ;;  %vm1531_vm10 = vcmp.gt.f32.partialorder %v1515_v9, 0.01  ;;  %v772_v9 = vld [vmem:[%s664_s18] sm:$0x3] }
 0x1ec   : > { %v1383_v7 = vsel %vm1369_vm0, %v1352_v50, 0.0  ;;  %v1645_v45 = vsub.f32 %v772_v9, %v773_v58 }
 0x1ed   : > { %v1579_v3 = vmul.f32 50.0, %v1563_v60  ;;  %v1384_v14 = vadd.f32 %v1383_v7, %v1382_v39 }
 0x1ee   : > { %v1474_v36 = vpop.f32.mrf.mxu2  ;;  %v1354_v22 = vpop.xlane.xlu1 %1353  ;;  %v1646_v39 = vand.u32 2147483647, %v1645_v45 }
 0x1ef   : > { %v1502_v8 = vsub.f32 %v1474_v36, %v750_v40  ;;  %v1595_v62 = vsel %vm1531_vm10, %v2091_v6, %v1579_v3  ;;  %v1385_v63 = vsel %vm1369_vm0, %v1354_v22, 0.0  ;;  %v1568_v40 = vmul.f32 %v1520_v27, %v1520_v27  ;;  %v754_v3 = vld [vmem:[%s3403_s25 + $0x70] sm:$0xff]  ;;  %v755_v27 = vld [vmem:[%s3403_s25 + $0x78] sm:$0xff] }
 0x1f0   : > { %v1356_v5 = vpop.xlane.xlu2 %1355  ;;  %v1618_v25 = vsel %vm1604_vm1, %v1595_v62, 0.0  ;;  %v1386_v59 = vadd.f32 %v1385_v63, %v1384_v14  ;;  %v1648_v62 = vsel %vm1647_vm14, %v1646_v39, 0.0 }
 0x1f1   : > { %v1518_v61 = vand.u32 2147483647, %v1502_v8  ;;  %v1619_v51 = vadd.f32 %v1618_v25, %v1617_v15  ;;  %v1387_v43 = vsel %vm1369_vm0, %v1356_v5, 0.0  ;;  %v1584_v54 = vmul.f32 50.0, %v1568_v40  ;;  %1649 = vadd.xlane.f32.xlu1 %v1648_v62 }
 0x1f2   : > { %v1388_v48 = vadd.f32 %v1387_v43, %v1386_v59  ;;  %v1684_v25 = vsel %vm1658_vm8, %v1683_v23, 0.0 }
 0x1f3   : > { %v1566_v20 = vmul.f32 %v1518_v61, %v1518_v61  ;;  %v1358_v28 = vpop.xlane.xlu0 %1357  ;;  %v2094_v16 = vadd.f32 -0.005, %v1518_v61  ;;  %vm1534_vm13 = vcmp.gt.f32.partialorder %v1518_v61, 0.01  ;;  %v1621_v4 = vadd.f32 %v1620_v53, %v1619_v51 }
 0x1f4   : > { %v1483_v2 = vpop.f32.mrf.mxu3  ;;  %v1389_v31 = vsel %vm1369_vm0, %v1358_v28, 0.0  ;;  %v1600_v28 = vsel %vm1536_vm3, %v2096_v32, %v1584_v54  ;;  %v1685_v43 = vrot.slane %v1684_v25, 4 }
 0x1f5   : > { %v1582_v29 = vmul.f32 50.0, %v1566_v20  ;;  %v1505_v34 = vsub.f32 %v1483_v2, %v753_v42  ;;  %v1390_v57 = vadd.f32 %v1389_v31, %v1388_v48  ;;  %v1623_v19 = vadd.f32 %v1622_v46, %v1621_v4  ;;  %v2376_v20 = vpop.eup %2375 }
 0x1f6   : > { %v1686_v4 = vadd.f32 %v1685_v43, %v1684_v25 }
 0x1f7   : > { %v1360_v37 = vpop.xlane.xlu1 %1359  ;;  %v1598_v33 = vsel %vm1534_vm13, %v2094_v16, %v1582_v29  ;;  %v1521_v60 = vand.u32 2147483647, %v1505_v34  ;;  %v1669_v29 = vsel %vm1658_vm8, %v2376_v20, 0.0  ;;  %v1628_v16 = vsel %vm1604_vm1, %v1600_v28, 0.0 }
 0x1f8   : > { %v1391_v21 = vsel %vm1369_vm0, %v1360_v37, 0.0  ;;  %v1624_v36 = vsel %vm1604_vm1, %v1598_v33, 0.0  ;;  %v1670_v34 = vrot.slane %v1669_v29, 4 }
 0x1f9   : > { %v1477_v52 = vpop.f32.mrf.mxu2  ;;  %v1392_v6 = vadd.f32 %v1391_v21, %v1390_v57  ;;  %v1569_v22 = vmul.f32 %v1521_v60, %v1521_v60  ;;  %v1625_v49 = vadd.f32 %v1624_v36, %v1623_v19  ;;  %v2097_v11 = vadd.f32 -0.005, %v1521_v60 }
 0x1fa   : > { %v1503_v55 = vsub.f32 %v1477_v52, %v751_v41  ;;  %vm1537_vm4 = vcmp.gt.f32.partialorder %v1521_v60, 0.01  ;;  %v1671_v52 = vadd.f32 %v1670_v34, %v1669_v29 }
 0x1fb   : > { %v1362_v50 = vpop.xlane.xlu2 %1361  ;;  %v1585_v17 = vmul.f32 50.0, %v1569_v22 }
 0x1fc   : > { %v1519_v7 = vand.u32 2147483647, %v1503_v55  ;;  %v1393_v61 = vsel %vm1369_vm0, %v1362_v50, 0.0  ;;  %v1672_v55 = vrot.slane %v1671_v52, 2 }
 0x1fd   : > { %v1394_v15 = vadd.f32 %v1393_v61, %v1392_v6  ;;  %v1601_v48 = vsel %vm1537_vm4, %v2097_v11, %v1585_v17 }
 0x1fe   : > { %v1567_v8 = vmul.f32 %v1519_v7, %v1519_v7  ;;  %v1486_v47 = vpop.f32.mrf.mxu3  ;;  %v2095_v1 = vadd.f32 -0.005, %v1519_v7  ;;  %vm1535_vm2 = vcmp.gt.f32.partialorder %v1519_v7, 0.01  ;;  %v1630_v50 = vsel %vm1604_vm1, %v1601_v48, 0.0 }
 0x1ff   : > { %v1506_v14 = vsub.f32 %v1486_v47, %v754_v3  ;;  %v1673_v32 = vadd.f32 %v1672_v55, %v1671_v52  ;;  %v1687_v3 = vrot.slane %v1686_v4, 2 }
 0x200   : > { %v1583_v5 = vmul.f32 50.0, %v1567_v8 }
 0x201   : > { %v1522_v30 = vand.u32 2147483647, %v1506_v14  ;;  %v1674_v39 = vrot.slane %v1673_v32, 1  ;;  %v1688_v54 = vadd.f32 %v1687_v3, %v1686_v4 }
 0x202   : > { %v1364_v44 = vpop.xlane.xlu0 %1363  ;;  %v1599_v63 = vsel %vm1535_vm2, %v2095_v1, %v1583_v5 }
 0x203   : > { %v1395_v59 = vsel %vm1369_vm0, %v1364_v44, 0.0  ;;  %v1626_v26 = vsel %vm1604_vm1, %v1599_v63, 0.0  ;;  %v1368_v38 = vpop.xlane.xlu2 %1367  ;;  %v1570_v12 = vmul.f32 %v1522_v30, %v1522_v30  ;;  %v2098_v37 = vadd.f32 -0.005, %v1522_v30 }
 0x204   : > { %v1366_v42 = vpop.xlane.xlu1 %1365  ;;  %v1396_v2 = vadd.f32 %v1395_v59, %v1394_v15  ;;  %v1627_v18 = vadd.f32 %v1626_v26, %v1625_v49  ;;  %v1399_v41 = vsel %vm1369_vm0, %v1368_v38, 0.0  ;;  %vm1538_vm5 = vcmp.gt.f32.partialorder %v1522_v30, 0.01 }
 0x205   : > { %v1397_v51 = vsel %vm1369_vm0, %v1366_v42, 0.0  ;;  %v1586_v35 = vmul.f32 50.0, %v1570_v12  ;;  %v1675_v22 = vadd.f32 %v1674_v39, %v1673_v32  ;;  %v1689_v44 = vrot.slane %v1688_v54, 1 }
 0x206   : > { %v1398_v31 = vadd.f32 %v1397_v51, %v1396_v2  ;;  %v1629_v46 = vadd.f32 %v1628_v16, %v1627_v18 }
 0x207   : > { %v1602_v0 = vsel %vm1538_vm5, %v2098_v37, %v1586_v35  ;;  %2377 = vlog2.f32 %v1675_v22  ;;  %v1690_v17 = vadd.f32 %v1689_v44, %v1688_v54 }
 0x208   : > { %v1400_v53 = vadd.f32 %v1399_v41, %v1398_v31  ;;  %v1631_v10 = vadd.f32 %v1630_v50, %v1629_v46  ;;  %v1632_v19 = vsel %vm1604_vm1, %v1602_v0, 0.0 }
 0x209   : > { %v1489_v9 = vpop.f32.mrf.mxu3 }
 0x20a   : > { %1401 = vadd.xlane.f32.xlu2 %v1400_v53  ;;  %v1272_v57 = vpop.xlane.xlu0 %1271  ;;  %v1507_v33 = vsub.f32 %v1489_v9, %v755_v27  ;;  %v1633_v47 = vadd.f32 %v1632_v19, %v1631_v10 }
 0x20b   : > { %v1273_v58 = vrot.slane %v1272_v57, 4 }
 0x20c   : > { %v1312_v60 = vpop.xlane.xlu1 %1311  ;;  %v1523_v45 = vand.u32 2147483647, %v1507_v33 }
 0x20d   : > { %v1313_v40 = vrot.slane %v1312_v60, 4  ;;  %v1274_v7 = vadd.f32 %v1273_v58, %v1272_v57  ;;  %v2378_v25 = vpop.eup %2377 }
 0x20e   : > { %v1571_v21 = vmul.f32 %v1523_v45, %v1523_v45  ;;  %v2099_v36 = vadd.f32 -0.005, %v1523_v45  ;;  %vm1539_vm0 = vcmp.gt.f32.partialorder %v1523_v45, 0.01  ;;  %v1677_v20 = vmul.f32 0.6931472, %v2378_v25 }
 0x20f   : > { %v1314_v13 = vadd.f32 %v1313_v40, %v1312_v60  ;;  %v1275_v6 = vrot.slane %v1274_v7, 2  ;;  %v3487_v60 = vand.u32 127, %v1679_v56 }
 0x210   : > { %v1587_v8 = vmul.f32 50.0, %v1571_v21  ;;  %v1678_v59 = vadd.f32 %v1677_v20, %v3450_v24 }
 0x211   : > { %v1315_v14 = vrot.slane %v1314_v13, 2  ;;  %v1276_v62 = vadd.f32 %v1275_v6, %v1274_v7  ;;  %vm1708_vm7 = vcmp.eq.s32.totalorder %v3487_v60, 1  ;;  %vm1705_vm8 = vcmp.eq.s32.totalorder %v3487_v60, 0 }
 0x212   : > { %v1603_v1 = vsel %vm1539_vm0, %v2099_v36, %v1587_v8  ;;  %v1691_v26 = vsub.f32 %v1678_v59, %v1690_v17  ;;  %vm1712_vm9 = vcmp.eq.s32.totalorder %v3487_v60, 2  ;;  %vm1716_vm10 = vcmp.eq.s32.totalorder %v3487_v60, 4 }
 0x213   : > { %v1277_v5 = vrot.slane %v1276_v62, 1  ;;  %v1316_v23 = vadd.f32 %v1315_v14, %v1314_v13  ;;  %v1634_v61 = vsel %vm1604_vm1, %v1603_v1, 0.0  ;;  %vm1720_vm11 = vcmp.eq.s32.totalorder %v3487_v60, 5 }
 0x214   : > { %v1635_v30 = vadd.f32 %v1634_v61, %v1633_v47  ;;  %v1693_v28 = vsel %vm1692_vm6, %v1691_v26, 0.0 }
 0x215   : > { %v1278_v49 = vadd.f32 %v1277_v5, %v1276_v62  ;;  %v1317_v15 = vrot.slane %v1316_v23, 1  ;;  %1694 = vadd.xlane.f32.xlu2 %v1693_v28 }
 0x216   : > { %1636 = vadd.xlane.f32.xlu0 %v1635_v30 }
 0x217   : > { %2158 = vpush %v1278_v49  ;;  %v1318_v63 = vadd.f32 %v1317_v15, %v1316_v23 }
 0x219   : > { %2160 = vpush %v1318_v63 }
 0x248   : > { %s2159_s14 = spop %2158 }
 0x24a   : > { %s2161_s17 = spop %2160 }
 0x24b   : > { %s1320_s20 = ssub.f32 %s2159_s14, %s2161_s17 }
 0x24d   : > { %v1709_v45 = vstv %s1320_s20 }
 0x24e   : > { %v1710_v32 = vsel %vm1708_vm7, %v1709_v45, 0.0 }
 0x264   : > { %v1650_v2 = vpop.xlane.xlu1 %1649 }
 0x265   : > { %v1651_v18 = vrot.slane %v1650_v2, 4 }
 0x267   : > { %v1652_v29 = vadd.f32 %v1651_v18, %v1650_v2 }
 0x269   : > { %v1653_v34 = vrot.slane %v1652_v29, 2 }
 0x26b   : > { %v1654_v48 = vadd.f32 %v1653_v34, %v1652_v29 }
 0x26d   : > { %v1655_v53 = vrot.slane %v1654_v48, 1 }
 0x26f   : > { %v1656_v37 = vadd.f32 %v1655_v53, %v1654_v48 }
 0x27d   : > { %v1402_v38 = vpop.xlane.xlu2 %1401 }
 0x27e   : > { %v1403_v42 = vrot.slane %v1402_v38, 4 }
 0x280   : > { %v1404_v12 = vadd.f32 %v1403_v42, %v1402_v38 }
 0x282   : > { %v1405_v11 = vrot.slane %v1404_v12, 2 }
 0x284   : > { %v1406_v51 = vadd.f32 %v1405_v11, %v1404_v12 }
 0x286   : > { %v1407_v43 = vrot.slane %v1406_v51, 1 }
 0x288   : > { %v1408_v31 = vadd.f32 %v1407_v43, %v1406_v51  ;;  %v1695_v52 = vpop.xlane.xlu2 %1694 }
 0x289   : > { %v1637_v41 = vpop.xlane.xlu0 %1636  ;;  %v1696_v9 = vrot.slane %v1695_v52, 4 }
 0x28a   : > { %2162 = vpush %v1408_v31  ;;  %v1638_v27 = vrot.slane %v1637_v41, 4 }
 0x28b   : > { %v1697_v57 = vadd.f32 %v1696_v9, %v1695_v52 }
 0x28c   : > { %v1639_v24 = vadd.f32 %v1638_v27, %v1637_v41 }
 0x28d   : > { %v1698_v33 = vrot.slane %v1697_v57, 2 }
 0x28e   : > { %v1640_v16 = vrot.slane %v1639_v24, 2 }
 0x28f   : > { %v1699_v55 = vadd.f32 %v1698_v33, %v1697_v57 }
 0x290   : > { %v1641_v35 = vadd.f32 %v1640_v16, %v1639_v24 }
 0x291   : > { %v1700_v58 = vrot.slane %v1699_v55, 1 }
 0x292   : > { %v1642_v46 = vrot.slane %v1641_v35, 1 }
 0x293   : > { %v1701_v50 = vadd.f32 %v1700_v58, %v1699_v55 }
 0x294   : > { %v1643_v4 = vadd.f32 %v1642_v46, %v1641_v35 }
 0x296   : > { %2164 = vpush %v1643_v4 }
 0x297   : > { %2166 = vpush %v1656_v37 }
 0x298   : > { %2168 = vpush %v1701_v50 }
 0x2bb   : > { %s2163_s25 = spop %2162 }
 0x2bc   : > { %s1410_s27 = ssub.f32 0.0, %s2163_s25 }
 0x2be   : > { %v1713_v0 = vstv %s1410_s27 }
 0x2bf   : > { %v1714_v3 = vsel %vm1712_vm9, %v1713_v0, 0.0 }
 0x2c7   : > { %s2165_s28 = spop %2164 }
 0x2c8   : > { %v1706_v10 = vstv %s2165_s28  ;;  %s2167_s5 = spop %2166 }
 0x2c9   : > { %v1707_v40 = vsel %vm1705_vm8, %v1706_v10, 0.0  ;;  %v1717_v56 = vstv %s2167_s5  ;;  %s2169_s6 = spop %2168 }
 0x2ca   : > { %v1711_v7 = vadd.f32 %v1710_v32, %v1707_v40  ;;  %v1718_v39 = vsel %vm1716_vm10, %v1717_v56, 0.0  ;;  %v1721_v6 = vstv %s2169_s6 }
 0x2cb   : > { %v1722_v19 = vsel %vm1720_vm11, %v1721_v6, 0.0 }
 0x2cc   : > { %v1715_v21 = vadd.f32 %v1714_v3, %v1711_v7  ;;  %1727 = sbr.rel (%p2100_p4) target bundleno = 723 (0x2d3), region = 64 }
 0x2ce   : > { %v1719_v13 = vadd.f32 %v1718_v39, %v1715_v21 }
 0x2d0   : > { %v3494_v36 = vadd.f32 %v1722_v19, %v1719_v13 }
 0x2d1   : > { %v2479_v8 = vmov 0.0  }
 0x2d2   : > { %1728 = vst [vmem:[%s2624_s19] sm:$0x1] %v2479_v8 }
 0x2d3 PF: > { %1733 = sbr.rel (!%p1724_p3) target bundleno = 944 (0x3b0), region = 68  ;;  %v1734_v47 = vld [vmem:[%s2679_s22] sm:$0xff] (%p1724_p3)  ;;  %v1735_v22 = vld [vmem:[%s2679_s22 + $0x8] sm:$0xff] (%p1724_p3)  ;;  %v1736_v14 = vld [vmem:[%s2679_s22 + $0x10] sm:$0xff] (%p1724_p3)  ;;  %vm1839_vm12 = vcmp.eq.s32.totalorder (%p1724_p3), %v3487_v60, 3 }
 0x2d4   : > { %v1737_v62 = vld [vmem:[%s2679_s22 + $0x18] sm:$0xff] (%p1724_p3)  ;;  %v1750_v54 = vmul.f32 (%p1724_p3), 9.0, %v1734_v47  ;;  %v1751_v1 = vmul.f32 (%p1724_p3), 9.0, %v1735_v22  ;;  %v1738_v5 = vld [vmem:[%s2679_s22 + $0x20] sm:$0xff] (%p1724_p3)  ;;  %v1752_v23 = vmul.f32 (%p1724_p3), 9.0, %v1736_v14  ;;  %v1739_v30 = vld [vmem:[%s2679_s22 + $0x28] sm:$0xff] (%p1724_p3) }
 0x2d5   : > { %v1753_v61 = vmul.f32 (%p1724_p3), 9.0, %v1737_v62  ;;  %v1754_v49 = vmul.f32 (%p1724_p3), 9.0, %v1738_v5  ;;  %v3694_v15 = vld [vmem:[#allocation30_spill] sm:$0xff] (%p1724_p3)  ;;  %v3695_v63 = vld [vmem:[#allocation29_spill] sm:$0xff] (%p1724_p3)  ;;  %v3696_v17 = vld [vmem:[#allocation28_spill] sm:$0xff] (%p1724_p3)  ;;  %v1755_v26 = vmul.f32 (%p1724_p3), 9.0, %v1739_v30 }
 0x2d6   : > { %v1766_v44 = vsub.f32 (%p1724_p3), %v3694_v15, %v1750_v54  ;;  %v1767_v25 = vsub.f32 (%p1724_p3), %v3695_v63, %v1751_v1  ;;  %v1740_v20 = vld [vmem:[%s2679_s22 + $0x30] sm:$0xff] (%p1724_p3)  ;;  %v1768_v59 = vsub.f32 (%p1724_p3), %v3696_v17, %v1752_v23  ;;  %v3697_v28 = vld [vmem:[#allocation27_spill] sm:$0xff] (%p1724_p3)  ;;  %v1742_v2 = vld [vmem:[%s2679_s22 + $0x40] sm:$0xff] (%p1724_p3) }
 0x2d7   : > { %v1769_v38 = vsub.f32 (%p1724_p3), %v3697_v28, %v1753_v61  ;;  %v1741_v42 = vld [vmem:[%s2679_s22 + $0x38] sm:$0xff] (%p1724_p3)  ;;  %v1756_v12 = vmul.f32 (%p1724_p3), 9.0, %v1740_v20  ;;  %v3698_v18 = vld [vmem:[#allocation26_spill] sm:$0xff] (%p1724_p3)  ;;  %v3699_v34 = vld [vmem:[#allocation25_spill] sm:$0xff] (%p1724_p3)  ;;  %v1758_v48 = vmul.f32 (%p1724_p3), 9.0, %v1742_v2 }
 0x2d8   : > { %v1770_v11 = vsub.f32 %v3698_v18, %v1754_v49  ;;  %v1782_v51 = vand.u32 2147483647, %v1766_v44  ;;  %v1783_v29 = vand.u32 2147483647, %v1767_v25  ;;  %v1784_v43 = vand.u32 2147483647, %v1768_v59 }
 0x2d9   : > { %v1757_v31 = vmul.f32 9.0, %v1741_v42  ;;  %v1771_v41 = vsub.f32 %v3699_v34, %v1755_v26  ;;  %v1785_v27 = vand.u32 2147483647, %v1769_v38  ;;  %v1743_v24 = vld [vmem:[%s2679_s22 + $0x48] sm:$0xff]  ;;  %v3700_v16 = vld [vmem:[#allocation24_spill] sm:$0xff]  ;;  %v1744_v9 = vld [vmem:[%s2679_s22 + $0x50] sm:$0xff] }
 0x2da   : > { %v1772_v35 = vsub.f32 %v3700_v16, %v1756_v12  ;;  %v1786_v53 = vand.u32 2147483647, %v1770_v11  ;;  %v1798_v46 = vsel %vm1604_vm1, %v1782_v51, 0.0  ;;  %v1799_v52 = vsel %vm1604_vm1, %v1783_v29, 0.0  ;;  %v3701_v33 = vld [vmem:[#allocation23_spill] sm:$0xff]  ;;  %v3702_v32 = vld [vmem:[#allocation22_spill] sm:$0xff] }
 0x2db   : > { %v1800_v4 = vadd.f32 %v1799_v52, %v1798_v46  ;;  %v1801_v37 = vsel %vm1604_vm1, %v1784_v43, 0.0  ;;  %v1759_v57 = vmul.f32 9.0, %v1743_v24  ;;  %v1773_v55 = vsub.f32 %v3701_v33, %v1757_v31  ;;  %v1745_v45 = vld [vmem:[%s2679_s22 + $0x58] sm:$0xff]  ;;  %v1746_v21 = vld [vmem:[%s2679_s22 + $0x60] sm:$0xff]  ;;  %v3703_v13 = vld [vmem:[#allocation21_spill] sm:$0xff] }
 0x2dc   : > { %v1787_v58 = vand.u32 2147483647, %v1771_v41  ;;  %v1803_v50 = vsel %vm1604_vm1, %v1785_v27, 0.0  ;;  %v1760_v10 = vmul.f32 9.0, %v1744_v9  ;;  %v1774_v40 = vsub.f32 %v3702_v32, %v1758_v48  ;;  %v1747_v47 = vld [vmem:[%s2679_s22 + $0x68] sm:$0xff]  ;;  %v3704_v62 = vld [vmem:[#allocation16_spill] sm:$0xff] }
 0x2dd   : > { %v1802_v0 = vadd.f32 %v1801_v37, %v1800_v4  ;;  %v1788_v7 = vand.u32 2147483647, %v1772_v35  ;;  %v1805_v3 = vsel %vm1604_vm1, %v1786_v53, 0.0  ;;  %v1761_v39 = vmul.f32 9.0, %v1745_v45  ;;  %v1748_v23 = vld [vmem:[%s2679_s22 + $0x70] sm:$0xff]  ;;  %v1749_v25 = vld [vmem:[%s2679_s22 + $0x78] sm:$0xff] }
 0x2de   : > { %v1775_v6 = vsub.f32 %v3703_v13, %v1759_v57  ;;  %v1789_v19 = vand.u32 2147483647, %v1773_v55  ;;  %v1807_v8 = vsel %vm1604_vm1, %v1787_v58, 0.0  ;;  %v1762_v14 = vmul.f32 9.0, %v1746_v21  ;;  %v3705_v49 = vld [vmem:[#allocation14_spill] sm:$0xff]  ;;  %v3706_v59 = vld [vmem:[#allocation12_spill] sm:$0xff] }
 0x2df   : > { %v1804_v56 = vadd.f32 %v1803_v50, %v1802_v0  ;;  %v1776_v54 = vsub.f32 %v3704_v62, %v1760_v10  ;;  %v1790_v1 = vand.u32 2147483647, %v1774_v40  ;;  %v1809_v5 = vsel %vm1604_vm1, %v1788_v7, 0.0  ;;  %v3707_v12 = vld [vmem:[#allocation11_spill] sm:$0xff]  ;;  %v3708_v43 = vld [vmem:[#allocation10_spill] sm:$0xff]  ;;  %v3709_v24 = vld [vmem:[#allocation9_spill] sm:$0xff] }
 0x2e0   : > { %v1763_v30 = vmul.f32 9.0, %v1747_v47  ;;  %v1777_v15 = vsub.f32 %v3705_v49, %v1761_v39  ;;  %v1791_v44 = vand.u32 2147483647, %v1775_v6  ;;  %v1811_v63 = vsel %vm1604_vm1, %v1789_v19, 0.0 }
 0x2e1   : > { %v1806_v22 = vadd.f32 %v1805_v3, %v1804_v56  ;;  %v1764_v17 = vmul.f32 9.0, %v1748_v23  ;;  %v1778_v26 = vsub.f32 %v3706_v59, %v1762_v14  ;;  %v1792_v28 = vand.u32 2147483647, %v1776_v54  ;;  %v1838_v56 = vld [vmem:[%s2624_s19] sm:$0x1] }
 0x2e2   : > { %v1813_v38 = vsel %vm1604_vm1, %v1790_v1, 0.0  ;;  %v1765_v2 = vmul.f32 9.0, %v1749_v25  ;;  %v1779_v18 = vsub.f32 %v3707_v12, %v1763_v30  ;;  %v1793_v11 = vand.u32 2147483647, %v1777_v15 }
 0x2e3   : > { %v1808_v61 = vadd.f32 %v1807_v8, %v1806_v22  ;;  %v1815_v51 = vsel %vm1604_vm1, %v1791_v44, 0.0  ;;  %v1780_v31 = vsub.f32 %v3708_v43, %v1764_v17  ;;  %v1794_v34 = vand.u32 2147483647, %v1778_v26 }
 0x2e4   : > { %v1817_v41 = vsel %vm1604_vm1, %v1792_v28, 0.0  ;;  %v1781_v48 = vsub.f32 %v3709_v24, %v1765_v2  ;;  %v1795_v16 = vand.u32 2147483647, %v1779_v18  ;;  %v1819_v35 = vsel %vm1604_vm1, %v1793_v11, 0.0 }
 0x2e5   : > { %v1810_v20 = vadd.f32 %v1809_v5, %v1808_v61  ;;  %v1796_v46 = vand.u32 2147483647, %v1780_v31  ;;  %v1821_v52 = vsel %vm1604_vm1, %v1794_v34, 0.0 }
 0x2e6   : > { %v1797_v4 = vand.u32 2147483647, %v1781_v48  ;;  %v1823_v37 = vsel %vm1604_vm1, %v1795_v16, 0.0 }
 0x2e7   : > { %v1812_v42 = vadd.f32 %v1811_v63, %v1810_v20  ;;  %v1825_v33 = vsel %vm1604_vm1, %v1796_v46, 0.0 }
 0x2e8   : > { %v1827_v58 = vsel %vm1604_vm1, %v1797_v4, 0.0 }
 0x2e9   : > { %v1814_v29 = vadd.f32 %v1813_v38, %v1812_v42 }
 0x2eb   : > { %v1816_v27 = vadd.f32 %v1815_v51, %v1814_v29 }
 0x2ed   : > { %v1818_v53 = vadd.f32 %v1817_v41, %v1816_v27 }
 0x2ef   : > { %v1820_v9 = vadd.f32 %v1819_v35, %v1818_v53 }
 0x2f1   : > { %v1822_v57 = vadd.f32 %v1821_v52, %v1820_v9 }
 0x2f3   : > { %v1824_v55 = vadd.f32 %v1823_v37, %v1822_v57 }
 0x2f5   : > { %v1826_v50 = vadd.f32 %v1825_v33, %v1824_v55 }
 0x2f7   : > { %v1828_v45 = vadd.f32 %v1827_v58, %v1826_v50 }
 0x2f9   : > { %1829 = vadd.xlane.f32.xlu0 %v1828_v45 }
 0x36c   : > { %v1830_v0 = vpop.xlane.xlu0 %1829 }
 0x36d   : > { %v1831_v10 = vrot.slane %v1830_v0, 4 }
 0x36f   : > { %v1832_v32 = vadd.f32 %v1831_v10, %v1830_v0 }
 0x371   : > { %v1833_v40 = vrot.slane %v1832_v32, 2 }
 0x373   : > { %v1834_v7 = vadd.f32 %v1833_v40, %v1832_v32 }
 0x375   : > { %v1835_v3 = vrot.slane %v1834_v7, 1 }
 0x377   : > { %v1836_v21 = vadd.f32 %v1835_v3, %v1834_v7 }
 0x379   : > { %2170 = vpush %v1836_v21 }
 0x3aa   : > { %s2171_s12 = spop %2170 }
 0x3ab   : > { %v1840_v39 = vstv %s2171_s12 }
 0x3ac   : > { %v1841_v13 = vsel %vm1839_vm12, %v1840_v39, 0.0 }
 0x3ad   : > { %v1842_v6 = vadd.f32 %v1841_v13, %v1838_v56 }
 0x3af   : > { %1843 = vst [vmem:[%s2624_s19] sm:$0x1] %v1842_v6 }
 0x3b0 PF:  {}
 0x3b6   : > { %v1844_v19 = vld [vmem:[%s2624_s19] sm:$0x1] }
 0x3b7   : > { %v1845_v8 = vadd.f32 %v1844_v19, %v3494_v36 }
 0x3b9   : > { %1846 = vst [vmem:[%s2624_s19] sm:$0x1] %v1845_v8 }
 0x3ba PF: > { %s22_s16 = sadd.s32 1, %s2475_s16   ;;  %s3710_s12 = sld [smem:[#allocation5_spill]] }
 0x3bb   : > { %p19_p5 = scmp.ge.s32.totalorder %s22_s16, 8   ;;  %s3711_s14 = sld [smem:[#allocation6_spill]] }
 0x3bc   : > { %s3712_s22 = sld [smem:[#allocation7_spill]]  ;;  %s3713_s30 = smov %s2451_s10 }
 0x3bd   : > { %s3714_s10 = smov %s2455_s11  ;;  %s3715_s11 = smov %s2597_s29 }
 0x3be   : > { %s3716_s13 = smov %s2471_s15  ;;  %21 = sbr.rel (!%p19_p5) target bundleno = 9 (0x9), region = 128 }
 0x3c2   : > { %s3717_s15 = smov %s3712_s22 }
 0x3c3   :  { %1870 = vsyncpa [#allocation3], 1 }
 0x3c4   :  { %1872 = vsyncpa [#allocation3 + $0x1], 1 }

</bundles_post_ra>
